<compile_context>
chip_gen: v7x
topology: tpu7x:2x2x1
jax: 0.10.0
libtpu: 0.0.40
codegen_flags: <defaults>
</compile_context>

<pallas_src>
import numpy as np
import jax
import jax.numpy as jnp
from jax.experimental import pallas as pl
from jax.experimental.pallas import tpu as pltpu


def _poisson_ve_kernel(x_ref, g_ref, coef_ref, w_ref, loss_ref,
                       noisy_f32_ref, noisy_bf16_ref):
    """x_ref/g_ref: (B, N) flat inputs / raw gaussian (resident).
    coef_ref: (B, 4) packed [samples_norm, c_skip, c_out, 1/sigma^2].
    w_ref: (N, tn) bf16 wrap_net weight column tile (streamed per grid step).
    loss_ref: (B, tn) output tile.
    noisy_*_ref: persistent VMEM scratch holding the full-width noisy sample."""
    tn = loss_ref.shape[1]

    # One-time full-width work (grid axis is sequential / "arbitrary", so the
    # j == 0 guard runs exactly once and the scratch persists across steps).
    @pl.when(pl.program_id(0) == 0)
    def _():
        x = x_ref[...]
        g = g_ref[...]
        s = coef_ref[:, 0:1]                                   # samples_norm
        # unit_gaussian = gaussian / ||gaussian||_2  (one XLU reduce + rsqrt).
        inv_norm = jax.lax.rsqrt(jnp.sum(g * g, axis=1, keepdims=True) + 1e-20)
        noisy = x + g * (inv_norm * s)                         # (B, N) f32
        noisy_f32_ref[...] = noisy
        noisy_bf16_ref[...] = noisy.astype(jnp.bfloat16)       # matmul LHS

    # Synthetic wrap_net: one MXU matmul tile, f32 accumulation.
    f_x = jnp.dot(noisy_bf16_ref[...], w_ref[...],
                  preferred_element_type=jnp.float32)          # (B, tn)

    # Column slice of this tile for the skip / loss terms.
    col = pl.ds(pl.multiple_of(pl.program_id(0) * tn, tn), tn)
    noisy_t = noisy_f32_ref[:, col]
    x_t = x_ref[:, col]

    c_skip = coef_ref[:, 1:2]
    c_out = coef_ref[:, 2:3]
    wgt = coef_ref[:, 3:4]                                     # 1 / sigma^2

    d_yn = c_skip * noisy_t + c_out * f_x
    diff = d_yn - x_t
    loss_ref[...] = wgt * diff * diff


def _pick_tn(N, *, w_bytes=2, budget_bytes=8 << 20):
    """Largest column tile (multiple of 128, divisor of N) whose
    double-buffered W block fits the budget — VMEM-aware for v7x (64 MiB)."""
    tn = N
    while tn > 128 and (2 * N * tn * w_bytes > budget_bytes or N % tn != 0):
        tn //= 2
    return tn


def poisson_ve_loss(inputs_nchw, gaussian, samples_norm, sigma, w_bf16, *,
                    tn=None):
    """Pallas wrapper.  Returns the loss with the same NCHW shape as inputs."""
    B = inputs_nchw.shape[0]
    N = int(np.prod(inputs_nchw.shape[1:]))
    assert N % 128 == 0, "flattened feature dim must be a multiple of 128"
    if tn is None:
        tn = _pick_tn(N)
    assert N % tn == 0 and tn % 128 == 0

    x_flat = inputs_nchw.reshape(B, N).astype(jnp.float32)
    gaussian = gaussian.astype(jnp.float32)

    # Sigma-derived per-row scalars, packed into one (B, 4) operand.
    sig = sigma.reshape(B, 1).astype(jnp.float32)
    c_skip = 1.0 / (1.0 + sig * sig)
    c_out = sig * jax.lax.rsqrt(1.0 + sig * sig)
    weight = 1.0 / (sig * sig)
    coef = jnp.concatenate(
        [samples_norm.reshape(B, 1).astype(jnp.float32), c_skip, c_out, weight],
        axis=1)                                                # (B, 4)

    # VMEM footprint estimate (sublane-padded, double-buffered pipeline
    # inputs) -> explicit, generation-safe vmem limit.
    pad_rows = -(-B // 8) * 8
    est = (2 * 2 * pad_rows * N * 4          # x, g resident, 2 buffers each
           + 2 * N * tn * 2                  # W bf16, 2 buffers
           + 2 * pad_rows * tn * 4           # output tile, 2 buffers
           + pad_rows * N * 4                # noisy f32 scratch
           + max(pad_rows, 16) * N * 2)      # noisy bf16 scratch (16-row pack)
    vmem_limit = int(min(max(2 * est, 16 << 20), 48 << 20))

    grid_spec = pltpu.PrefetchScalarGridSpec(
        num_scalar_prefetch=0,
        grid=(N // tn,),
        in_specs=[
            pl.BlockSpec((B, N), lambda j: (0, 0)),    # inputs (resident)
            pl.BlockSpec((B, N), lambda j: (0, 0)),    # gaussian (resident)
            pl.BlockSpec((B, 4), lambda j: (0, 0)),    # packed per-row scalars
            pl.BlockSpec((N, tn), lambda j: (0, j)),   # W columns (bf16 stream)
        ],
        out_specs=pl.BlockSpec((B, tn), lambda j: (0, j)),
        scratch_shapes=[
            pltpu.VMEM((B, N), jnp.float32),            # noisy (skip term)
            pltpu.VMEM((B, N), jnp.bfloat16),           # noisy (matmul LHS)
        ],
    )

    loss_flat = pl.pallas_call(
        _poisson_ve_kernel,
        out_shape=jax.ShapeDtypeStruct((B, N), jnp.float32),
        grid_spec=grid_spec,
        compiler_params=pltpu.CompilerParams(
            # "arbitrary": the j == 0 scratch init requires sequential steps.
            dimension_semantics=("arbitrary",),
            vmem_limit_bytes=vmem_limit),
    )(x_flat, gaussian, coef, w_bf16)

    return loss_flat.reshape(inputs_nchw.shape)


def _reference_loss(x_flat, g, s, sig, w_bf16):
    """Pure-JAX reference of the same computation (bf16 matmul, f32 accum)."""
    inv_norm = jax.lax.rsqrt(jnp.sum(g * g, axis=1, keepdims=True) + 1e-20)
    noisy = x_flat + g * (inv_norm * s)
    c_skip = 1.0 / (1.0 + sig * sig)
    c_out = sig / jnp.sqrt(1.0 + sig * sig)
    f = jnp.dot(noisy.astype(jnp.bfloat16), w_bf16,
                preferred_element_type=jnp.float32)
    d = c_skip * noisy + c_out * f
    return (1.0 / (sig * sig)) * (d - x_flat) ** 2


if __name__ == "__main__":
    # Module hyper-parameters (D as in the default; N = C*H*W of the inputs).
    sigma_min, sigma_max, D = 0.02, 100.0, 128
    B, C, H, W = 2, 4, 16, 16
    N = C * H * W  # 1024

    key = jax.random.PRNGKey(0)
    k_x, k_u, k_beta, k_g, k_w = jax.random.split(key, 5)

    # Clean inputs (NCHW).
    inputs = jax.random.normal(k_x, (B, C, H, W), dtype=jnp.float32)

    # sigma = sigma_min * (sigma_max / sigma_min) ** U(0,1)
    rnd_uniform = jax.random.uniform(k_u, (B,), dtype=jnp.float32)
    sigma = sigma_min * (sigma_max / sigma_min) ** rnd_uniform          # (B,)

    # r = sigma * sqrt(D) ; Beta(N/2, D/2) -> inverse_beta -> radial scale.
    # (PyTorch does this part in float64; we keep float32 — numerics only.)
    r = sigma * np.sqrt(float(D)).astype(np.float32)
    beta_s = jax.random.beta(k_beta, N / 2.0, D / 2.0, (B,), dtype=jnp.float32)
    beta_s = jnp.clip(beta_s, 0.001, 1.0 - 0.001)
    inverse_beta = beta_s / (1.0 - beta_s + 1e-8)
    samples_norm = (r * jnp.sqrt(inverse_beta + 1e-8)).reshape(B, 1)    # (B, 1)

    # Raw gaussian that the kernel normalizes row-wise.
    gaussian = jax.random.normal(k_g, (B, N), dtype=jnp.float32)

    # Deterministic synthetic wrap_net weight, stored as bf16 (halves HBM read).
    w_bf16 = ((jax.random.normal(k_w, (N, N), dtype=jnp.float32)
               / jnp.sqrt(jnp.float32(N))).astype(jnp.bfloat16))

    sigma_col = sigma.reshape(B, 1).astype(jnp.float32)

    loss = poisson_ve_loss(inputs, gaussian, samples_norm, sigma_col, w_bf16)
    loss = jax.block_until_ready(loss)

    assert loss.shape == inputs.shape and loss.dtype == jnp.float32

    # Sanity check against pure-JAX reference (same dtype choices).
    ref = _reference_loss(inputs.reshape(B, N), gaussian, samples_norm,
                          sigma_col, w_bf16).reshape(inputs.shape)
    ref = jax.block_until_ready(ref)
    np.testing.assert_allclose(np.asarray(loss), np.asarray(ref),
                               rtol=5e-3, atol=1e-4)

    print("KERNEL_OK")
</pallas_src>

<mosaic_0001>
module attributes {stable_mosaic.version = 11 : i64} {
  func.func @_poisson_ve_kernel(%arg0: i32, %arg1: memref<2x1024xf32, #tpu.memory_space<vmem>>, %arg2: memref<2x1024xf32, #tpu.memory_space<vmem>>, %arg3: memref<2x4xf32, #tpu.memory_space<vmem>>, %arg4: memref<1024x1024xbf16, #tpu.memory_space<vmem>>, %arg5: memref<2x1024xf32, #tpu.memory_space<vmem>>, %arg6: memref<2x1024xf32, #tpu.memory_space<vmem>>, %arg7: memref<2x1024xbf16, #tpu.memory_space<vmem>>) attributes {dimension_semantics = [#tpu.dimension_semantics<arbitrary>], iteration_bounds = array<i64: 1>, scalar_prefetch = 0 : i64, scratch_operands = 2 : i64, tpu.core_type = #tpu.core_type<tc>, window_params = [{pipeline_mode = #tpu.pipeline_mode<synchronous>, transform_indices = @transform_0, window_bounds = array<i64: 2, 1024>}, {pipeline_mode = #tpu.pipeline_mode<synchronous>, transform_indices = @transform_1, window_bounds = array<i64: 2, 1024>}, {pipeline_mode = #tpu.pipeline_mode<synchronous>, transform_indices = @transform_2, window_bounds = array<i64: 2, 4>}, {transform_indices = @transform_3, window_bounds = array<i64: 1024, 1024>}, {transform_indices = @transform_4, window_bounds = array<i64: 2, 1024>}]} {
    %c0_i32 = arith.constant 0 : i32
    %0 = arith.cmpi eq, %arg0, %c0_i32 : i32
    %1 = arith.extui %0 : i1 to i32
    %c0_i32_0 = arith.constant 0 : i32
    %2 = arith.cmpi ne, %1, %c0_i32_0 : i32
    scf.if %2 {
      %c0_11 = arith.constant 0 : index
      %c0_12 = arith.constant 0 : index
      %25 = vector.load %arg1[%c0_11, %c0_12] : memref<2x1024xf32, #tpu.memory_space<vmem>>, vector<2x1024xf32>
      %c0_13 = arith.constant 0 : index
      %c0_14 = arith.constant 0 : index
      %26 = vector.load %arg2[%c0_13, %c0_14] : memref<2x1024xf32, #tpu.memory_space<vmem>>, vector<2x1024xf32>
      %c0_15 = arith.constant 0 : index
      %c0_16 = arith.constant 0 : index
      %27 = vector.load %arg3[%c0_15, %c0_16] : memref<2x4xf32, #tpu.memory_space<vmem>>, vector<2x1xf32>
      %28 = arith.mulf %26, %26 : vector<2x1024xf32>
      %cst_17 = arith.constant dense<0.000000e+00> : vector<2xf32>
      %29 = vector.multi_reduction <add>, %28, %cst_17 [1] : vector<2x1024xf32> to vector<2xf32>
      %30 = vector.shape_cast %29 : vector<2xf32> to vector<2x1xf32>
      %cst_18 = arith.constant 9.99999968E-21 : f32
      %31 = vector.broadcast %cst_18 : f32 to vector<2x1xf32>
      %32 = arith.addf %30, %31 : vector<2x1xf32>
      %33 = math.rsqrt %32 : vector<2x1xf32>
      %34 = arith.mulf %33, %27 : vector<2x1xf32>
      %35 = vector.broadcast %34 : vector<2x1xf32> to vector<2x1024xf32>
      %36 = arith.mulf %26, %35 : vector<2x1024xf32>
      %37 = arith.addf %25, %36 : vector<2x1024xf32>
      %c0_19 = arith.constant 0 : index
      %c0_20 = arith.constant 0 : index
      %38 = vector.load %arg6[%c0_19, %c0_20] : memref<2x1024xf32, #tpu.memory_space<vmem>>, vector<2x1024xf32>
      tpu.vector_store %arg6[%c0_19, %c0_20], %37 {strides = array<i32>} : memref<2x1024xf32, #tpu.memory_space<vmem>>, vector<2x1024xf32>,
      %39 = arith.truncf %37 : vector<2x1024xf32> to vector<2x1024xbf16>
      %c0_21 = arith.constant 0 : index
      %c0_22 = arith.constant 0 : index
      %40 = vector.load %arg7[%c0_21, %c0_22] : memref<2x1024xbf16, #tpu.memory_space<vmem>>, vector<2x1024xbf16>
      tpu.vector_store %arg7[%c0_21, %c0_22], %39 {strides = array<i32>} : memref<2x1024xbf16, #tpu.memory_space<vmem>>, vector<2x1024xbf16>,
    } else {
    }
    %c0 = arith.constant 0 : index
    %c0_1 = arith.constant 0 : index
    %3 = vector.load %arg7[%c0, %c0_1] : memref<2x1024xbf16, #tpu.memory_space<vmem>>, vector<2x1024xbf16>
    %c0_2 = arith.constant 0 : index
    %c0_3 = arith.constant 0 : index
    %4 = vector.load %arg4[%c0_2, %c0_3] : memref<1024x1024xbf16, #tpu.memory_space<vmem>>, vector<1024x1024xbf16>
    %cst = arith.constant dense<0.000000e+00> : vector<2x1024xf32>
    %5 = tpu.matmul %3, %4, %cst {dimension_numbers = #tpu.dot_dimension_numbers<[1], [0], [0], [1], [0, 0, 1, 1], [], []>} : vector<2x1024xbf16>, vector<1024x1024xbf16>, vector<2x1024xf32> -> vector<2x1024xf32>
    %c1024_i32 = arith.constant 1024 : i32
    %6 = arith.muli %arg0, %c1024_i32 : i32
    %7 = tpu.assume_multiple %6, 1024 : i32
    %c0_4 = arith.constant 0 : index
    %8 = arith.index_cast %7 : i32 to index
    %9 = vector.load %arg6[%c0_4, %8] : memref<2x1024xf32, #tpu.memory_space<vmem>>, vector<2x1024xf32>
    %c0_5 = arith.constant 0 : index
    %10 = arith.index_cast %7 : i32 to index
    %11 = vector.load %arg1[%c0_5, %10] : memref<2x1024xf32, #tpu.memory_space<vmem>>, vector<2x1024xf32>
    %c0_6 = arith.constant 0 : index
    %c1 = arith.constant 1 : index
    %12 = vector.load %arg3[%c0_6, %c1] : memref<2x4xf32, #tpu.memory_space<vmem>>, vector<2x1xf32>
    %c0_7 = arith.constant 0 : index
    %c2 = arith.constant 2 : index
    %13 = vector.load %arg3[%c0_7, %c2] : memref<2x4xf32, #tpu.memory_space<vmem>>, vector<2x1xf32>
    %c0_8 = arith.constant 0 : index
    %c3 = arith.constant 3 : index
    %14 = vector.load %arg3[%c0_8, %c3] : memref<2x4xf32, #tpu.memory_space<vmem>>, vector<2x1xf32>
    %15 = vector.broadcast %12 : vector<2x1xf32> to vector<2x1024xf32>
    %16 = arith.mulf %15, %9 : vector<2x1024xf32>
    %17 = vector.broadcast %13 : vector<2x1xf32> to vector<2x1024xf32>
    %18 = arith.mulf %17, %5 : vector<2x1024xf32>
    %19 = arith.addf %16, %18 : vector<2x1024xf32>
    %20 = arith.subf %19, %11 : vector<2x1024xf32>
    %21 = vector.broadcast %14 : vector<2x1xf32> to vector<2x1024xf32>
    %22 = arith.mulf %21, %20 : vector<2x1024xf32>
    %23 = arith.mulf %22, %20 : vector<2x1024xf32>
    %c0_9 = arith.constant 0 : index
    %c0_10 = arith.constant 0 : index
    %24 = vector.load %arg5[%c0_9, %c0_10] : memref<2x1024xf32, #tpu.memory_space<vmem>>, vector<2x1024xf32>
    tpu.vector_store %arg5[%c0_9, %c0_10], %23 {strides = array<i32>} : memref<2x1024xf32, #tpu.memory_space<vmem>>, vector<2x1024xf32>,
    return
  }
  func.func @transform_0(%arg0: i32) -> (i32, i32) {
    %c0_i32 = arith.constant 0 : i32
    %c0_i32_0 = arith.constant 0 : i32
    %c0_i32_1 = arith.constant 0 : i32
    return %c0_i32, %c0_i32_0 : i32, i32
  }
  func.func @transform_1(%arg0: i32) -> (i32, i32) {
    %c0_i32 = arith.constant 0 : i32
    %c0_i32_0 = arith.constant 0 : i32
    %c0_i32_1 = arith.constant 0 : i32
    return %c0_i32, %c0_i32_0 : i32, i32
  }
  func.func @transform_2(%arg0: i32) -> (i32, i32) {
    %c0_i32 = arith.constant 0 : i32
    %c0_i32_0 = arith.constant 0 : i32
    %c0_i32_1 = arith.constant 0 : i32
    return %c0_i32, %c0_i32_0 : i32, i32
  }
  func.func @transform_3(%arg0: i32) -> (i32, i32) {
    %c0_i32 = arith.constant 0 : i32
    %c0_i32_0 = arith.constant 0 : i32
    return %c0_i32, %arg0 : i32, i32
  }
  func.func @transform_4(%arg0: i32) -> (i32, i32) {
    %c0_i32 = arith.constant 0 : i32
    %c0_i32_0 = arith.constant 0 : i32
    return %c0_i32, %arg0 : i32, i32
  }
}

</mosaic_0001>

<bundles_post_ra>
// kernel: tpu_custom_call.1
= control target key start
LH: loop header
LB: loop body
LE: loop exit
PB: predicated region body
PF: predicated region fallthrough
CT: control target
= control target key end

     0   :  { %9 = vsyncpa [#allocation5], 0  ;;  %s5289_s0 = inlined_call_operand.hbm [shape: f32[2,1024], index: 0, kind: input, shape index: {}]   ;;  %s5290_s1 = inlined_call_operand.hbm [shape: f32[2,1024], index: 1, kind: input, shape index: {}]   ;;  %s5291_s2 = inlined_call_operand.hbm [shape: f32[2,4], index: 2, kind: input, shape index: {}]   ;;  %s5292_s3 = inlined_call_operand.hbm [shape: bf16[1024,1024], index: 3, kind: input, shape index: {}]   ;;  %s5293_s4 = inlined_call_operand.hbm [shape: f32[2,1024], index: 4, kind: output, shape index: {}]  }
   0x1   :  { %10 = vsyncpa [#allocation8], 0 }
   0x2   :  { %11 = vsyncpa [#allocation11], 0 }
   0x3   :  { %12 = vsyncpa [#allocation6], 0  ;;  %s4994_s15 = smov [#allocation7]   ;;  %s4995_s17 = smov [#allocation4]  }
   0x4   :  { %s29_s16 = sshll.u32 %s4994_s15, 4  ;;  %s19_s18 = sshll.u32 %s4995_s17, 4  ;;  %s30_s16 = int_to_ptr.vmem [resolvable:$true] %s29_s16  ;;  %s20_s18 = int_to_ptr.vmem [resolvable:$true] %s19_s18 }
   0x5   :  { %s4876_s21 = scalar_lea.hbm %s5290_s1, 256 }
   0x6   :  { %p4877_p0 = scmp.ne.s32.totalorder %s5290_s1, %s4876_s21  ;;  %p4880_p1 = scmp.lt.u32.totalorder %s4876_s21, %s5290_s1 }
   0x8   :  { %p4882_p2 = pnand %p4880_p1, %p4877_p0 }
   0xa   :  { %4885 = shalt.err (!%p4882_p2)
}
   0xb   :  { %s4886_s26 = scalar_lea.vmem %s30_s16, 256  ;;  %p4891_p4 = scmp.lt.s32.totalorder %s30_s16, %s30_s16 }
   0xc   :  { %p4887_p3 = scmp.ne.s32.totalorder %s30_s16, %s4886_s26  ;;  %p4892_p5 = scmp.lt.s32.totalorder %s4886_s26, %s4886_s26 }
   0xe   :  { %p4893_p6 = por %p4892_p5, %p4891_p4 }
  0x10   :  { %p4894_p7 = pnand %p4893_p6, %p4887_p3 }
  0x12   :  { %4897 = shalt.err (!%p4894_p7)
}
  0x13   :  { %32 = dma.hbm_to_vmem [thread:$0]  %s5290_s1, 256, %s30_s16, [#allocation8]  }
  0x14   :  { %s4898_s5 = scalar_lea.hbm %s5289_s0, 256 }
  0x15   :  { %p4899_p8 = scmp.ne.s32.totalorder %s5289_s0, %s4898_s5  ;;  %p4902_p9 = scmp.lt.u32.totalorder %s4898_s5, %s5289_s0 }
  0x17   :  { %p4904_p10 = pnand %p4902_p9, %p4899_p8 }
  0x19   :  { %4907 = shalt.err (!%p4904_p10)
}
  0x1a   :  { %s4908_s10 = scalar_lea.vmem %s20_s18, 256  ;;  %p4913_p12 = scmp.lt.s32.totalorder %s20_s18, %s20_s18 }
  0x1b   :  { %p4909_p11 = scmp.ne.s32.totalorder %s20_s18, %s4908_s10  ;;  %p4914_p13 = scmp.lt.s32.totalorder %s4908_s10, %s4908_s10 }
  0x1d   :  { %p4915_p0 = por %p4914_p13, %p4913_p12 }
  0x1f   :  { %p4916_p1 = pnand %p4915_p0, %p4909_p11 }
  0x21   :  { %4919 = shalt.err (!%p4916_p1)
}
  0x22   :  { %22 = dma.hbm_to_vmem [thread:$0]  %s5289_s0, 256, %s20_s18, [#allocation5]  }
  0x23   :  { %s4996_s12 = smov [#allocation9]   ;;  %s4997_s14 = smov [#allocation10]  }
  0x24   :  { %s39_s13 = sshll.u32 %s4996_s12, 4  ;;  %s48_s15 = sshll.u32 %s4997_s14, 4  ;;  %s40_s13 = int_to_ptr.vmem [resolvable:$true] %s39_s13  ;;  %s5057_s15 = int_to_ptr.vmem [resolvable:$true] %s48_s15 }
  0x25   :  { %s4920_s19 = scalar_lea.hbm %s5291_s2, 32 }
  0x26   :  { %p4921_p2 = scmp.ne.s32.totalorder %s5291_s2, %s4920_s19  ;;  %p4924_p3 = scmp.lt.u32.totalorder %s4920_s19, %s5291_s2 }
  0x28   :  { %p4926_p4 = pnand %p4924_p3, %p4921_p2 }
  0x2a   :  { %4929 = shalt.err (!%p4926_p4)
}
  0x2b   :  { %s4930_s0 = scalar_lea.vmem %s40_s13, 32  ;;  %p4935_p6 = scmp.lt.s32.totalorder %s40_s13, %s40_s13 }
  0x2c   :  { %p4931_p5 = scmp.ne.s32.totalorder %s40_s13, %s4930_s0  ;;  %p4936_p7 = scmp.lt.s32.totalorder %s4930_s0, %s4930_s0 }
  0x2e   :  { %p4937_p8 = por %p4936_p7, %p4935_p6 }
  0x30   :  { %p4938_p9 = pnand %p4937_p8, %p4931_p5 }
  0x32   :  { %4941 = shalt.err (!%p4938_p9)
}
  0x33   :  { %42 = dma.hbm_to_vmem [thread:$0]  %s5291_s2, 32, %s40_s13, [#allocation8]  }
  0x34   :  { %s4942_s27 = scalar_lea.hbm %s5292_s3, 65536 }
  0x35   :  { %p4943_p10 = scmp.ne.s32.totalorder %s5292_s3, %s4942_s27  ;;  %p4946_p11 = scmp.lt.u32.totalorder %s4942_s27, %s5292_s3 }
  0x37   :  { %p4948_p12 = pnand %p4946_p11, %p4943_p10 }
  0x39   :  { %4951 = shalt.err (!%p4948_p12)
}
  0x3a   :  { %s4952_s6 = scalar_lea.vmem %s5057_s15, 65536  ;;  %p4957_p0 = scmp.lt.s32.totalorder %s5057_s15, %s5057_s15 }
  0x3b   :  { %p4953_p13 = scmp.ne.s32.totalorder %s5057_s15, %s4952_s6  ;;  %p4958_p1 = scmp.lt.s32.totalorder %s4952_s6, %s4952_s6 }
  0x3d   :  { %p4959_p2 = por %p4958_p1, %p4957_p0 }
  0x3f   :  { %p4960_p3 = pnand %p4959_p2, %p4953_p13 }
  0x41   :  { %4963 = shalt.err (!%p4960_p3)
}
  0x42   :  { %s4998_s2 = smov 512   ;;  %s4999_s7 = smov 32  }
  0x43   :  { %54 = dma.hbm_to_vmem [thread:$0]  %s5292_s3, 65536, %s5057_s15, [#allocation11], %s4998_s2, %s4998_s2, %s4999_s7  }
  0x44   :  { %4986 = dma.done.wait [#allocation5], 256  }
  0x45   :  { %4987 = vsyncadd [#allocation5], 4294967040 }
  0x46   :  { %4988 = dma.done.wait [#allocation8], 288  }
  0x47   :  { %4989 = vsyncadd [#allocation8], 4294967008 }
  0x48   :  { %4990 = dma.done.wait [#allocation11], 65536  }
  0x49   :  { %4991 = vsyncadd [#allocation11], 4294901760  ;;  %v84_v0 = vlaneseq  ;;  %v5000_v1 = vmov 1983009808   ;;  %v5093_v6 = vld [vmem:[#allocation7] sm:$0xff]  ;;  %v5095_v7 = vld [vmem:[#allocation7 + $0x8] sm:$0xff] }
  0x4a   :  { %v82_v2 = vunpack.c.l.s4 %v5000_v1  ;;  %v76_v8 = vmul.f32 %v5093_v6, %v5093_v6  ;;  %v77_v9 = vmul.f32 %v5095_v7, %v5095_v7  ;;  %vm122_vm0 = vcmask 1041408   ;;  %v4070_v36 = vld [vmem:[#allocation9] sm:$0x3]  ;;  %v273_v37 = vld [vmem:[#allocation10] sm:$0xff]  ;;  %v274_v41 = vld [vmem:[#allocation10 + $0x8] sm:$0xff]  ;;  %s5007_s3 = smov [#allocation12]  }
  0x4b   :  { %v5088_v3 = vshrl.u32 %v84_v0, 7  ;;  %v5001_v35 = vmov 0   ;;  %v277_v38 = vld [vmem:[#allocation10 + $0x20] sm:$0xff]  ;;  %v5002_v39 = vmov 1   ;;  %v278_v42 = vld [vmem:[#allocation10 + $0x28] sm:$0xff]  ;;  %s4272_s10 = sshll.u32 %s5007_s3, 4  ;;  %s4273_s10 = int_to_ptr.vmem [resolvable:$true] %s4272_s10 }
  0x4c   :  { %v83_v4 = vunpack.c.0.s8 %v82_v2  ;;  %v80_v10 = vcombine.high %v76_v8, %v76_v8  ;;  %v97_v14 = vcombine.high %v77_v9, %v77_v9  ;;  %4866 = vset.pattern.permute.xlu0 %v5001_v35  ;;  %4867 = vset.pattern.permute.xlu1 %v5002_v39  ;;  %v4292_v40 = vcombine.high %v273_v37, %v277_v38  ;;  %v281_v44 = vld [vmem:[#allocation10 + $0x40] sm:$0xff]  ;;  %v282_v48 = vld [vmem:[#allocation10 + $0x48] sm:$0xff]  ;;  %s4964_s1 = scalar_lea.vmem %s4273_s10, 256  ;;  %p4969_p5 = scmp.lt.s32.totalorder %s4273_s10, %s4273_s10 }
  0x4d   :  { %v4291_v43 = vcombine.low %v273_v37, %v277_v38  ;;  %4073 = vperm.xlu1 %4867, %v4070_v36   ;;  %v4294_v45 = vcombine.high %v274_v41, %v278_v42  ;;  %v4293_v46 = vcombine.low %v274_v41, %v278_v42  ;;  %v285_v47 = vld [vmem:[#allocation10 + $0x60] sm:$0xff]  ;;  %v286_v49 = vld [vmem:[#allocation10 + $0x68] sm:$0xff]  ;;  %p4965_p4 = scmp.ne.s32.totalorder %s4273_s10, %s4964_s1  ;;  %p4970_p6 = scmp.lt.s32.totalorder %s4964_s1, %s4964_s1 }
  0x4e   :  { %v5091_v5 = vsub.s32 %v83_v4, %v5088_v3  ;;  %3403 = vmatprep.subr.bf16.mxu0 %v4292_v40  ;;  %v4300_v50 = vcombine.high %v281_v44, %v285_v47  ;;  %v4302_v51 = vcombine.high %v282_v48, %v286_v49  ;;  %v289_v52 = vld [vmem:[#allocation10 + $0x80] sm:$0xff]  ;;  %v290_v54 = vld [vmem:[#allocation10 + $0x88] sm:$0xff]  ;;  %v4299_v55 = vcombine.low %v281_v44, %v285_v47 }
  0x4f   :  { %v293_v53 = vld [vmem:[#allocation10 + $0xa0] sm:$0xff]  ;;  %3567 = vmatprep.subr.bf16.mxu1 %v4294_v45  ;;  %3404 = vmatpush1.bf16.msra.mxu0 %v4291_v43  ;;  %v294_v56 = vld [vmem:[#allocation10 + $0xa8] sm:$0xff]  ;;  %v4301_v57 = vcombine.low %v282_v48, %v286_v49  ;;  %p4971_p7 = por %p4970_p6, %p4969_p5 }
  0x50   :  { %v87_v11 = vrot.slane %v76_v8, %v5091_v5  ;;  %v94_v12 = vrot.slane %v80_v10, %v5091_v5  ;;  %v104_v15 = vrot.slane %v77_v9, %v5091_v5  ;;  %v111_v21 = vrot.slane %v97_v14, %v5091_v5  ;;  %3568 = vmatpush1.bf16.msra.mxu1 %v4293_v46  ;;  %v297_v60 = vld [vmem:[#allocation10 + $0xc0] sm:$0xff]  ;;  %v298_v62 = vld [vmem:[#allocation10 + $0xc8] sm:$0xff] }
  0x51   :  { %3405 = vmatprep.subr.bf16.mxu0 %v4300_v50  ;;  %v4308_v58 = vcombine.high %v289_v52, %v293_v53  ;;  %3569 = vmatprep.subr.bf16.mxu1 %v4302_v51  ;;  %v4310_v59 = vcombine.high %v290_v54, %v294_v56  ;;  %v301_v61 = vld [vmem:[#allocation10 + $0xe0] sm:$0xff]  ;;  %v302_v63 = vld [vmem:[#allocation10 + $0xe8] sm:$0xff]  ;;  %v4307_v0 = vcombine.low %v289_v52, %v293_v53  ;;  %v75_v52 = vld [vmem:[#allocation9] sm:$0x3]  ;;  %p4972_p8 = pnand %p4971_p7, %p4965_p4 }
  0x52   :  { %v95_v13 = vcombine.high %v87_v11, %v87_v11  ;;  %v123_v16 = vsel %vm122_vm0, %v87_v11, 0.0  ;;  %v96_v17 = vcombine.high %v94_v12, %v94_v12  ;;  %v126_v19 = vsel %vm122_vm0, %v94_v12, 0.0  ;;  %v305_v8 = vld [vmem:[#allocation10 + $0x100] sm:$0xff]  ;;  %v306_v10 = vld [vmem:[#allocation10 + $0x108] sm:$0xff] }
  0x53   :  { %v112_v22 = vcombine.high %v104_v15, %v104_v15  ;;  %v130_v25 = vsel %vm122_vm0, %v104_v15, 0.0  ;;  %v113_v27 = vcombine.high %v111_v21, %v111_v21  ;;  %v134_v30 = vsel %vm122_vm0, %v111_v21, 0.0  ;;  %3406 = vmatpush1.bf16.msra.mxu0 %v4299_v55  ;;  %v309_v9 = vld [vmem:[#allocation10 + $0x120] sm:$0xff]  ;;  %v310_v11 = vld [vmem:[#allocation10 + $0x128] sm:$0xff] }
  0x54   :  { %v124_v18 = vsel %vm122_vm0, %v95_v13, 0.0  ;;  %v128_v23 = vsel %vm122_vm0, %v96_v17, 0.0  ;;  %3570 = vmatpush1.bf16.msra.mxu1 %v4301_v57  ;;  %3407 = vmatprep.subr.bf16.mxu0 %v4308_v58  ;;  %v4309_v1 = vcombine.low %v290_v54, %v294_v56  ;;  %v4316_v2 = vcombine.high %v297_v60, %v301_v61  ;;  %v317_v17 = vld [vmem:[#allocation10 + $0x160] sm:$0xff]  ;;  %v334_v35 = vld [vmem:[#allocation10 + $0x1e8] sm:$0xff] }
  0x55   :  { %v125_v20 = vadd.f32 %v124_v18, %v123_v16  ;;  %v132_v28 = vsel %vm122_vm0, %v112_v22, 0.0  ;;  %v136_v32 = vsel %vm122_vm0, %v113_v27, 0.0  ;;  %3571 = vmatprep.subr.bf16.mxu1 %v4310_v59  ;;  %v4318_v4 = vcombine.high %v298_v62, %v302_v63  ;;  %v313_v16 = vld [vmem:[#allocation10 + $0x140] sm:$0xff]  ;;  %v314_v18 = vld [vmem:[#allocation10 + $0x148] sm:$0xff] }
  0x56   :  { %v4315_v12 = vcombine.low %v297_v60, %v301_v61  ;;  %v4317_v13 = vcombine.low %v298_v62, %v302_v63  ;;  %v4324_v14 = vcombine.high %v305_v8, %v309_v9  ;;  %v4326_v15 = vcombine.high %v306_v10, %v310_v11  ;;  %v326_v27 = vld [vmem:[#allocation10 + $0x1a8] sm:$0xff]  ;;  %v337_v40 = vld [vmem:[#allocation10 + $0x200] sm:$0xff] }
  0x57   :  { %v127_v24 = vadd.f32 %v126_v19, %v125_v20  ;;  %3408 = vmatpush1.bf16.msra.mxu0 %v4307_v0  ;;  %v318_v19 = vld [vmem:[#allocation10 + $0x168] sm:$0xff]  ;;  %v4323_v20 = vcombine.low %v305_v8, %v309_v9  ;;  %v4325_v21 = vcombine.low %v306_v10, %v310_v11  ;;  %v4332_v22 = vcombine.high %v313_v16, %v317_v17  ;;  %v341_v41 = vld [vmem:[#allocation10 + $0x220] sm:$0xff] }
  0x58   :  { %3572 = vmatpush1.bf16.msra.mxu1 %v4309_v1  ;;  %3409 = vmatprep.subr.bf16.mxu0 %v4316_v2  ;;  %v338_v42 = vld [vmem:[#allocation10 + $0x208] sm:$0xff]  ;;  %v4356_v46 = vcombine.high %v337_v40, %v341_v41  ;;  %v4355_v48 = vcombine.low %v337_v40, %v341_v41  ;;  %v345_v54 = vld [vmem:[#allocation10 + $0x240] sm:$0xff] }
  0x59   :  { %v129_v26 = vadd.f32 %v128_v23, %v127_v24  ;;  %3573 = vmatprep.subr.bf16.mxu1 %v4318_v4  ;;  %v4334_v23 = vcombine.high %v314_v18, %v318_v19  ;;  %v321_v24 = vld [vmem:[#allocation10 + $0x180] sm:$0xff]  ;;  %v342_v43 = vld [vmem:[#allocation10 + $0x228] sm:$0xff] }
  0x5a   :  { %v4358_v47 = vcombine.high %v338_v42, %v342_v43  ;;  %v4357_v49 = vcombine.low %v338_v42, %v342_v43  ;;  %v349_v55 = vld [vmem:[#allocation10 + $0x260] sm:$0xff]  ;;  %v346_v56 = vld [vmem:[#allocation10 + $0x248] sm:$0xff] }
  0x5b   :  { %v131_v29 = vadd.f32 %v130_v25, %v129_v26  ;;  %3410 = vmatpush1.bf16.msra.mxu0 %v4315_v12  ;;  %v325_v25 = vld [vmem:[#allocation10 + $0x1a0] sm:$0xff]  ;;  %v322_v26 = vld [vmem:[#allocation10 + $0x188] sm:$0xff]  ;;  %v4364_v58 = vcombine.high %v345_v54, %v349_v55  ;;  %v4363_v61 = vcombine.low %v345_v54, %v349_v55 }
  0x5c   :  { %3574 = vmatpush1.bf16.msra.mxu1 %v4317_v13  ;;  %3411 = vmatprep.subr.bf16.mxu0 %v4324_v14  ;;  %v4339_v36 = vcombine.low %v321_v24, %v325_v25  ;;  %v4341_v37 = vcombine.low %v322_v26, %v326_v27  ;;  %v350_v59 = vld [vmem:[#allocation10 + $0x268] sm:$0xff]  ;;  %v353_v63 = vld [vmem:[#allocation10 + $0x280] sm:$0xff] }
  0x5d   :  { %v133_v31 = vadd.f32 %v132_v28, %v131_v29  ;;  %3575 = vmatprep.subr.bf16.mxu1 %v4326_v15  ;;  %v4331_v28 = vcombine.low %v313_v16, %v317_v17  ;;  %v4333_v29 = vcombine.low %v314_v18, %v318_v19  ;;  %v4366_v60 = vcombine.high %v346_v56, %v350_v59  ;;  %v357_v0 = vld [vmem:[#allocation10 + $0x2a0] sm:$0xff]  ;;  %v354_v1 = vld [vmem:[#allocation10 + $0x288] sm:$0xff] }
  0x5e   :  { %v4365_v62 = vcombine.low %v346_v56, %v350_v59  ;;  %v4372_v2 = vcombine.high %v353_v63, %v357_v0  ;;  %v358_v4 = vld [vmem:[#allocation10 + $0x2a8] sm:$0xff]  ;;  %v4371_v9 = vcombine.low %v353_v63, %v357_v0  ;;  %v361_v11 = vld [vmem:[#allocation10 + $0x2c0] sm:$0xff]  ;;  %v5003_v59 = vmov 269488144  }
  0x5f   :  { %v135_v33 = vadd.f32 %v134_v30, %v133_v31  ;;  %3412 = vmatpush1.bf16.msra.mxu0 %v4323_v20  ;;  %v4340_v30 = vcombine.high %v321_v24, %v325_v25  ;;  %v4342_v31 = vcombine.high %v322_v26, %v326_v27  ;;  %v4374_v8 = vcombine.high %v354_v1, %v358_v4  ;;  %v365_v12 = vld [vmem:[#allocation10 + $0x2e0] sm:$0xff]  ;;  %v362_v13 = vld [vmem:[#allocation10 + $0x2c8] sm:$0xff] }
  0x60   :  { %3576 = vmatpush1.bf16.msra.mxu1 %v4325_v21  ;;  %3413 = vmatprep.subr.bf16.mxu0 %v4332_v22  ;;  %v4373_v10 = vcombine.low %v354_v1, %v358_v4  ;;  %v4380_v14 = vcombine.high %v361_v11, %v365_v12  ;;  %v366_v15 = vld [vmem:[#allocation10 + $0x2e8] sm:$0xff]  ;;  %v4379_v17 = vcombine.low %v361_v11, %v365_v12  ;;  %v369_v19 = vld [vmem:[#allocation10 + $0x300] sm:$0xff]  ;;  %v5004_v1 = vmov 1966171168  }
  0x61   :  { %v137_v34 = vadd.f32 %v136_v32, %v135_v33  ;;  %3577 = vmatprep.subr.bf16.mxu1 %v4334_v23  ;;  %v329_v32 = vld [vmem:[#allocation10 + $0x1c0] sm:$0xff]  ;;  %v4382_v16 = vcombine.high %v362_v13, %v366_v15  ;;  %v4381_v18 = vcombine.low %v362_v13, %v366_v15  ;;  %v370_v21 = vld [vmem:[#allocation10 + $0x308] sm:$0xff] }
  0x62   :  { %v333_v33 = vld [vmem:[#allocation10 + $0x1e0] sm:$0xff]  ;;  %v374_v23 = vld [vmem:[#allocation10 + $0x328] sm:$0xff] }
  0x63   :  { %138 = vadd.xlane.f32.xlu0 %v137_v34  ;;  %v330_v34 = vld [vmem:[#allocation10 + $0x1c8] sm:$0xff]  ;;  %3414 = vmatpush1.bf16.msra.mxu0 %v4331_v28  ;;  %v4348_v38 = vcombine.high %v329_v32, %v333_v33  ;;  %v4347_v44 = vcombine.low %v329_v32, %v333_v33  ;;  %v373_v20 = vld [vmem:[#allocation10 + $0x320] sm:$0xff]  ;;  %v4390_v24 = vcombine.high %v370_v21, %v374_v23 }
  0x64   :  { %3578 = vmatpush1.bf16.msra.mxu1 %v4333_v29  ;;  %3415 = vmatprep.subr.bf16.mxu0 %v4340_v30  ;;  %v4350_v39 = vcombine.high %v330_v34, %v334_v35  ;;  %v4349_v45 = vcombine.low %v330_v34, %v334_v35  ;;  %v4388_v22 = vcombine.high %v369_v19, %v373_v20  ;;  %v377_v27 = vld [vmem:[#allocation10 + $0x340] sm:$0xff]  ;;  %v378_v29 = vld [vmem:[#allocation10 + $0x348] sm:$0xff] }
  0x65   :  { %3579 = vmatprep.subr.bf16.mxu1 %v4342_v31  ;;  %v4387_v25 = vcombine.low %v369_v19, %v373_v20  ;;  %v4389_v26 = vcombine.low %v370_v21, %v374_v23  ;;  %v381_v28 = vld [vmem:[#allocation10 + $0x360] sm:$0xff]  ;;  %v382_v31 = vld [vmem:[#allocation10 + $0x368] sm:$0xff] }
  0x66   :  { %v4396_v30 = vcombine.high %v377_v27, %v381_v28  ;;  %v4398_v32 = vcombine.high %v378_v29, %v382_v31  ;;  %v4395_v33 = vcombine.low %v377_v27, %v381_v28  ;;  %v4397_v34 = vcombine.low %v378_v29, %v382_v31  ;;  %v385_v35 = vld [vmem:[#allocation10 + $0x380] sm:$0xff]  ;;  %v5121_v55 = vld [vmem:[#allocation10 + $0x428] sm:$0xff] }
  0x67   :  { %3416 = vmatpush1.bf16.msra.mxu0 %v4339_v36  ;;  %v389_v36 = vld [vmem:[#allocation10 + $0x3a0] sm:$0xff] }
  0x68   :  { %3580 = vmatpush1.bf16.msra.mxu1 %v4341_v37  ;;  %3417 = vmatprep.subr.bf16.mxu0 %v4348_v38  ;;  %v386_v37 = vld [vmem:[#allocation10 + $0x388] sm:$0xff]  ;;  %v4404_v38 = vcombine.high %v385_v35, %v389_v36  ;;  %v4403_v40 = vcombine.low %v385_v35, %v389_v36  ;;  %v393_v41 = vld [vmem:[#allocation10 + $0x3c0] sm:$0xff] }
  0x69   :  { %3581 = vmatprep.subr.bf16.mxu1 %v4350_v39  ;;  %v390_v39 = vld [vmem:[#allocation10 + $0x3a8] sm:$0xff]  ;;  %v397_v42 = vld [vmem:[#allocation10 + $0x3e0] sm:$0xff] }
  0x6a   :  { %v4406_v43 = vcombine.high %v386_v37, %v390_v39  ;;  %v71_v4 = vld [vmem:[#allocation4] sm:$0xff] }
  0x6b   :  { %3418 = vmatpush1.bf16.msra.mxu0 %v4347_v44  ;;  %v4405_v44 = vcombine.low %v386_v37, %v390_v39  ;;  %v409_v39 = vld [vmem:[#allocation10 + $0x440] sm:$0xff] }
  0x6c   :  { %3582 = vmatpush1.bf16.msra.mxu1 %v4349_v45  ;;  %3419 = vmatprep.subr.bf16.mxu0 %v4356_v46  ;;  %v4412_v45 = vcombine.high %v393_v41, %v397_v42  ;;  %v394_v46 = vld [vmem:[#allocation10 + $0x3c8] sm:$0xff] }
  0x6d   :  { %3583 = vmatprep.subr.bf16.mxu1 %v4358_v47  ;;  %v398_v47 = vld [vmem:[#allocation10 + $0x3e8] sm:$0xff] }
  0x6f   :  { %3420 = vmatpush1.bf16.msra.mxu0 %v4355_v48  ;;  %v4414_v48 = vcombine.high %v394_v46, %v398_v47 }
  0x70   :  { %3584 = vmatpush1.bf16.msra.mxu1 %v4357_v49  ;;  %3421 = vmatprep.subr.bf16.mxu0 %v4364_v58  ;;  %v4411_v49 = vcombine.low %v393_v41, %v397_v42  ;;  %v413_v41 = vld [vmem:[#allocation10 + $0x460] sm:$0xff]  ;;  %v410_v42 = vld [vmem:[#allocation10 + $0x448] sm:$0xff] }
  0x71   :  { %3585 = vmatprep.subr.bf16.mxu1 %v4366_v60  ;;  %v148_v60 = vunpack.c.l.s4 %v5003_v59  ;;  %v418_v59 = vld [vmem:[#allocation10 + $0x488] sm:$0xff] }
  0x73   :  { %3422 = vmatpush1.bf16.msra.mxu0 %v4363_v61  ;;  %v149_v61 = vunpack.c.0.s8 %v148_v60  ;;  %v422_v60 = vld [vmem:[#allocation10 + $0x4a8] sm:$0xff] }
  0x74   :  { %3586 = vmatpush1.bf16.msra.mxu1 %v4365_v62  ;;  %3423 = vmatprep.subr.bf16.mxu0 %v4372_v2  ;;  %v226_v2 = vunpack.c.l.s4 %v5004_v1  ;;  %v425_v1 = vld [vmem:[#allocation10 + $0x4c0] sm:$0xff] }
  0x75   :  { %3587 = vmatprep.subr.bf16.mxu1 %v4374_v8  ;;  %v152_v62 = vsub.s32 %v149_v61, %v5088_v3  ;;  %v72_v8 = vld [vmem:[#allocation4 + $0x8] sm:$0xff]  ;;  %v4427_v61 = vcombine.low %v409_v39, %v413_v41 }
  0x76   :  { %v227_v13 = vunpack.c.0.s8 %v226_v2  ;;  %v429_v2 = vld [vmem:[#allocation10 + $0x4e0] sm:$0xff] }
  0x77   :  { %3424 = vmatpush1.bf16.msra.mxu0 %v4371_v9 }
  0x78   :  { %3588 = vmatpush1.bf16.msra.mxu1 %v4373_v10  ;;  %3425 = vmatprep.subr.bf16.mxu0 %v4380_v14  ;;  %v230_v20 = vsub.s32 %v227_v13, %v5088_v3 }
  0x79   :  { %3589 = vmatprep.subr.bf16.mxu1 %v4382_v16 }
  0x7b   :  { %3426 = vmatpush1.bf16.msra.mxu0 %v4379_v17 }
  0x7c   :  { %3590 = vmatpush1.bf16.msra.mxu1 %v4381_v18  ;;  %3427 = vmatprep.subr.bf16.mxu0 %v4388_v22 }
  0x7d   :  { %3591 = vmatprep.subr.bf16.mxu1 %v4390_v24 }
  0x7f   :  { %3428 = vmatpush1.bf16.msra.mxu0 %v4387_v25 }
  0x80   :  { %3592 = vmatpush1.bf16.msra.mxu1 %v4389_v26  ;;  %3429 = vmatprep.subr.bf16.mxu0 %v4396_v30 }
  0x81   :  { %3593 = vmatprep.subr.bf16.mxu1 %v4398_v32 }
  0x83   :  { %3430 = vmatpush1.bf16.msra.mxu0 %v4395_v33 }
  0x84   :  { %3594 = vmatpush1.bf16.msra.mxu1 %v4397_v34  ;;  %3431 = vmatprep.subr.bf16.mxu0 %v4404_v38 }
  0x85   :  { %3595 = vmatprep.subr.bf16.mxu1 %v4406_v43  ;;  %v414_v43 = vld [vmem:[#allocation10 + $0x468] sm:$0xff] }
  0x87   :  { %3432 = vmatpush1.bf16.msra.mxu0 %v4403_v40 }
  0x88   :  { %3596 = vmatpush1.bf16.msra.mxu1 %v4405_v44  ;;  %3433 = vmatprep.subr.bf16.mxu0 %v4412_v45 }
  0x89   :  { %3597 = vmatprep.subr.bf16.mxu1 %v4414_v48  ;;  %v417_v48 = vld [vmem:[#allocation10 + $0x480] sm:$0xff] }
  0x8b   :  { %3434 = vmatpush1.bf16.msra.mxu0 %v4411_v49 }
  0xf0   :  { %v139_v50 = vpop.xlane.xlu0 %138 }
  0xf1   :  { %v140_v51 = vadd.f32 1e-20, %v139_v50  ;;  %v4413_v50 = vcombine.low %v394_v46, %v398_v47 }
  0xf3   :  { %4873 = vrsqrt.f32 %v140_v51  ;;  %v5113_v51 = vld [vmem:[#allocation10 + $0x400] sm:$0xff]  ;;  %3598 = vmatpush1.bf16.msra.mxu1 %v4413_v50  ;;  %v4428_v50 = vcombine.high %v409_v39, %v413_v41  ;;  %v462_v39 = vld [vmem:[#allocation10 + $0x5e8] sm:$0xff] }
  0xfd   :  { %v4874_v53 = vpop.eup %4873 }
  0xfe   :  { %v142_v57 = vmul.f32 %v4874_v53, %v75_v52  ;;  %v5115_v52 = vld [vmem:[#allocation10 + $0x420] sm:$0xff]  ;;  %v5117_v53 = vld [vmem:[#allocation10 + $0x408] sm:$0xff] }
  0xff   :  { %v4420_v54 = vcombine.high %v5113_v51, %v5115_v52  ;;  %v4419_v56 = vcombine.low %v5113_v51, %v5115_v52  ;;  %v4422_v58 = vcombine.high %v5117_v53, %v5121_v55  ;;  %v4437_v52 = vcombine.low %v418_v59, %v422_v60 }
 0x100   :  { %145 = vperm.xlu0 %4866, %v142_v57   ;;  %v4421_v57 = vcombine.low %v5117_v53, %v5121_v55  ;;  %v4444_v53 = vcombine.high %v425_v1, %v429_v2 }
 0x101   :  { %3444 = vmatprep.subr.bf16.mxu0 %v4420_v54  ;;  %3608 = vmatprep.subr.bf16.mxu1 %v4422_v58  ;;  %v4430_v54 = vcombine.high %v410_v42, %v414_v43  ;;  %v421_v58 = vld [vmem:[#allocation10 + $0x4a0] sm:$0xff] }
 0x102   :  { %v4435_v51 = vcombine.low %v417_v48, %v421_v58 }
 0x17f   :  { %v146_v63 = vpop.permute.xlu0 %145 }
 0x180   :  { %v153_v0 = vrot.slane %v146_v63, %v152_v62  ;;  %v4429_v62 = vcombine.low %v410_v42, %v414_v43  ;;  %v4436_v63 = vcombine.high %v417_v48, %v421_v58  ;;  %v465_v48 = vld [vmem:[#allocation10 + $0x600] sm:$0xff]  ;;  %v470_v58 = vld [vmem:[#allocation10 + $0x628] sm:$0xff] }
 0x182   :  { %v155_v9 = vmul.f32 %v153_v0, %v5093_v6  ;;  %v156_v10 = vmul.f32 %v153_v0, %v5095_v7  ;;  %v4438_v0 = vcombine.high %v418_v59, %v422_v60 }
 0x184   :  { %v157_v11 = vadd.f32 %v155_v9, %v71_v4  ;;  %v158_v12 = vadd.f32 %v156_v10, %v72_v8  ;;  %v426_v4 = vld [vmem:[#allocation10 + $0x4c8] sm:$0xff] }
 0x185   :  { %v430_v8 = vld [vmem:[#allocation10 + $0x4e8] sm:$0xff] }
 0x186   :  { %v163_v14 = vcombine.high %v157_v11, %v157_v11  ;;  %v5133_v15 = vrot.slane %v157_v11, %v5091_v5  ;;  %v180_v16 = vcombine.high %v158_v12, %v158_v12  ;;  %v5136_v17 = vrot.slane %v158_v12, %v5091_v5  ;;  %v434_v9 = vld [vmem:[#allocation10 + $0x508] sm:$0xff] }
 0x187   :  { %v4446_v55 = vcombine.high %v426_v4, %v430_v8  ;;  %v438_v10 = vld [vmem:[#allocation10 + $0x528] sm:$0xff]  ;;  %v4443_v11 = vcombine.low %v425_v1, %v429_v2  ;;  %v4445_v12 = vcombine.low %v426_v4, %v430_v8 }
 0x188   :  { %v5139_v18 = vrot.slane %v163_v14, %v5091_v5  ;;  %v5143_v19 = vcombine.high %v5133_v15, %v5133_v15  ;;  %v5146_v6 = vrot.slane %v180_v16, %v5091_v5  ;;  %v5150_v7 = vcombine.high %v5136_v17, %v5136_v17  ;;  %v441_v16 = vld [vmem:[#allocation10 + $0x540] sm:$0xff]  ;;  %v474_v1 = vld [vmem:[#allocation10 + $0x648] sm:$0xff] }
 0x189   :  { %v4454_v14 = vcombine.high %v434_v9, %v438_v10  ;;  %v478_v2 = vld [vmem:[#allocation10 + $0x668] sm:$0xff] }
 0x18a   :  { %v5155_v21 = vcombine.high %v5139_v18, %v5139_v18  ;;  %v5159_v22 = vcombine.high %v5146_v6, %v5146_v6  ;;  %v4287_v23 = vpack.c.bf16 %v5143_v19, %v5133_v15  ;;  %v4289_v24 = vpack.c.bf16 %v5150_v7, %v5136_v17 }
 0x18c   :  { %v4288_v25 = vpack.c.bf16 %v5155_v21, %v5139_v18  ;;  %v4290_v3 = vpack.c.bf16 %v5159_v22, %v5146_v6  ;;  %v231_v26 = vrot.slane %v4287_v23, %v230_v20  ;;  %v245_v28 = vrot.slane %v4289_v24, %v230_v20  ;;  %v442_v23 = vld [vmem:[#allocation10 + $0x548] sm:$0xff] }
 0x18d   :  { %v446_v24 = vld [vmem:[#allocation10 + $0x568] sm:$0xff] }
 0x18e   :  { %v238_v27 = vrot.slane %v4288_v25, %v230_v20  ;;  %v252_v29 = vrot.slane %v4290_v3, %v230_v20  ;;  %v4453_v3 = vcombine.low %v434_v9, %v438_v10  ;;  %v4493_v10 = vcombine.low %v474_v1, %v478_v2 }
 0x190   :  { %v253_v30 = vcombine.low %v231_v26, %v238_v27  ;;  %v254_v31 = vcombine.low %v245_v28, %v252_v29  ;;  %v4462_v27 = vcombine.high %v442_v23, %v446_v24  ;;  %v449_v28 = vld [vmem:[#allocation10 + $0x580] sm:$0xff] }
 0x191   :  { %v453_v29 = vld [vmem:[#allocation10 + $0x5a0] sm:$0xff] }
 0x192   :  { %v261_v32 = vrot.slane %v253_v30, %v230_v20  ;;  %v268_v33 = vrot.slane %v254_v31, %v230_v20  ;;  %v450_v30 = vld [vmem:[#allocation10 + $0x588] sm:$0xff] }
 0x193   :  { %v454_v31 = vld [vmem:[#allocation10 + $0x5a8] sm:$0xff] }
 0x194   :  { %v269_v34 = vcombine.low %v261_v32, %v268_v33  ;;  %v4803_v35 = vcombine.low %v268_v33, %v268_v33  ;;  %v4461_v33 = vcombine.low %v442_v23, %v446_v24  ;;  %v4469_v41 = vcombine.low %v450_v30, %v454_v31 }
 0x196   :  { %v793_v36 = vrot.slane %v269_v34, %v230_v20  ;;  %v800_v37 = vrot.slane %v4803_v35, %v230_v20  ;;  %v4468_v34 = vcombine.high %v449_v28, %v453_v29  ;;  %v4470_v35 = vcombine.high %v450_v30, %v454_v31 }
 0x198   :  { %v801_v38 = vcombine.high %v793_v36, %v793_v36  ;;  %v802_v40 = vcombine.high %v800_v37, %v800_v37  ;;  %v5169_v44 = vrot.slane %v800_v37, %v230_v20  ;;  %v5175_v47 = vrot.slane %v793_v36, %v230_v20  ;;  %v457_v36 = vld [vmem:[#allocation10 + $0x5c0] sm:$0xff] }
 0x199   :  { %v461_v37 = vld [vmem:[#allocation10 + $0x5e0] sm:$0xff] }
 0x19a   :  { %v5171_v45 = vrot.slane %v801_v38, %v230_v20  ;;  %v5173_v46 = vrot.slane %v802_v40, %v230_v20  ;;  %v445_v20 = vld [vmem:[#allocation10 + $0x560] sm:$0xff]  ;;  %v458_v38 = vld [vmem:[#allocation10 + $0x5c8] sm:$0xff]  ;;  %v4467_v40 = vcombine.low %v449_v28, %v453_v29  ;;  %v4476_v42 = vcombine.high %v457_v36, %v461_v37 }
 0x19b   :  { %v4460_v26 = vcombine.high %v441_v16, %v445_v20  ;;  %v4459_v32 = vcombine.low %v441_v16, %v445_v20  ;;  %v4478_v43 = vcombine.high %v458_v38, %v462_v39  ;;  %v4475_v59 = vcombine.low %v457_v36, %v461_v37  ;;  %v490_v16 = vld [vmem:[#allocation10 + $0x6c8] sm:$0xff] }
 0x19c   :  { %3435 = vmatprep.mubr.bf16.mxu0 %v5171_v45  ;;  %3599 = vmatprep.mubr.bf16.mxu1 %v5171_v45  ;;  %v5181_v49 = vcombine.high %v5171_v45, %v5171_v45  ;;  %v4477_v60 = vcombine.low %v458_v38, %v462_v39  ;;  %v494_v20 = vld [vmem:[#allocation10 + $0x6e8] sm:$0xff] }
 0x19d   :  { %3436 = vmatmul.mubr.bf16.vlgmr.msra.gmra.mrb[0].mxu0 %v5175_v47  ;;  %3600 = vmatmul.mubr.bf16.vlgmr.msra.gmra.mrb[0].mxu1 %v5175_v47  ;;  %v498_v28 = vld [vmem:[#allocation10 + $0x708] sm:$0xff]  ;;  %v4509_v31 = vcombine.low %v490_v16, %v494_v20 }
 0x19e   :  { %3445 = vmatpush1.bf16.msra.mxu0 %v4419_v56  ;;  %3609 = vmatpush1.bf16.msra.mxu1 %v4421_v57  ;;  %v433_v56 = vld [vmem:[#allocation10 + $0x500] sm:$0xff]  ;;  %v502_v29 = vld [vmem:[#allocation10 + $0x728] sm:$0xff] }
 0x19f   :  { %3476 = vmatprep.mubr.bf16.mxu0 %v5181_v49  ;;  %3640 = vmatprep.mubr.bf16.mxu1 %v5181_v49  ;;  %v437_v57 = vld [vmem:[#allocation10 + $0x520] sm:$0xff]  ;;  %v506_v36 = vld [vmem:[#allocation10 + $0x748] sm:$0xff]  ;;  %v4517_v39 = vcombine.low %v498_v28, %v502_v29 }
 0x1a0   :  { %3446 = vmatprep.subr.bf16.mxu0 %v4428_v50  ;;  %3610 = vmatprep.subr.bf16.mxu1 %v4430_v54  ;;  %v4452_v13 = vcombine.high %v433_v56, %v437_v57  ;;  %v4451_v25 = vcombine.low %v433_v56, %v437_v57  ;;  %v469_v50 = vld [vmem:[#allocation10 + $0x620] sm:$0xff]  ;;  %v466_v54 = vld [vmem:[#allocation10 + $0x608] sm:$0xff] }
 0x1a1   :  { %v4483_v4 = vcombine.low %v465_v48, %v469_v50  ;;  %v4485_v8 = vcombine.low %v466_v54, %v470_v58  ;;  %v482_v56 = vld [vmem:[#allocation10 + $0x688] sm:$0xff] }
 0x1a2   :  { %3447 = vmatpush1.bf16.msra.mxu0 %v4427_v61  ;;  %3611 = vmatpush1.bf16.msra.mxu1 %v4429_v62  ;;  %v4484_v61 = vcombine.high %v465_v48, %v469_v50  ;;  %v4486_v62 = vcombine.high %v466_v54, %v470_v58  ;;  %v486_v57 = vld [vmem:[#allocation10 + $0x6a8] sm:$0xff] }
 0x1a3   :  { %3448 = vmatprep.subr.bf16.mxu0 %v4436_v63  ;;  %3612 = vmatprep.subr.bf16.mxu1 %v4438_v0  ;;  %v473_v63 = vld [vmem:[#allocation10 + $0x640] sm:$0xff]  ;;  %v4501_v24 = vcombine.low %v482_v56, %v486_v57  ;;  %v510_v37 = vld [vmem:[#allocation10 + $0x768] sm:$0xff] }
 0x1a4   :  { %v477_v0 = vld [vmem:[#allocation10 + $0x660] sm:$0xff]  ;;  %v514_v48 = vld [vmem:[#allocation10 + $0x788] sm:$0xff]  ;;  %v4525_v58 = vcombine.low %v506_v36, %v510_v37 }
 0x1a5   :  { %v4491_v9 = vcombine.low %v473_v63, %v477_v0  ;;  %v518_v50 = vld [vmem:[#allocation10 + $0x7a8] sm:$0xff] }
 0x1a6   :  { %3449 = vmatpush1.bf16.msra.mxu0 %v4435_v51  ;;  %3613 = vmatpush1.bf16.msra.mxu1 %v4437_v52  ;;  %v4492_v51 = vcombine.high %v473_v63, %v477_v0  ;;  %v4494_v52 = vcombine.high %v474_v1, %v478_v2  ;;  %v522_v63 = vld [vmem:[#allocation10 + $0x7c8] sm:$0xff]  ;;  %v4533_v2 = vcombine.low %v514_v48, %v518_v50 }
 0x1a7   :  { %3450 = vmatprep.subr.bf16.mxu0 %v4444_v53  ;;  %3614 = vmatprep.subr.bf16.mxu1 %v4446_v55  ;;  %v481_v53 = vld [vmem:[#allocation10 + $0x680] sm:$0xff]  ;;  %v526_v0 = vld [vmem:[#allocation10 + $0x7e8] sm:$0xff] }
 0x1a8   :  { %v485_v55 = vld [vmem:[#allocation10 + $0x6a0] sm:$0xff] }
 0x1a9   :  { %v4499_v23 = vcombine.low %v481_v53, %v485_v55 }
 0x1aa   :  { %3451 = vmatpush1.bf16.msra.mxu0 %v4443_v11  ;;  %3615 = vmatpush1.bf16.msra.mxu1 %v4445_v12  ;;  %v4500_v11 = vcombine.high %v481_v53, %v485_v55  ;;  %v4502_v12 = vcombine.high %v482_v56, %v486_v57  ;;  %v530_v53 = vld [vmem:[#allocation10 + $0x808] sm:$0xff]  ;;  %v4541_v57 = vcombine.low %v522_v63, %v526_v0 }
 0x1ab   :  { %3452 = vmatprep.subr.bf16.mxu0 %v4452_v13  ;;  %3616 = vmatprep.subr.bf16.mxu1 %v4454_v14  ;;  %v489_v13 = vld [vmem:[#allocation10 + $0x6c0] sm:$0xff]  ;;  %v534_v55 = vld [vmem:[#allocation10 + $0x828] sm:$0xff] }
 0x1ac   :  { %v493_v14 = vld [vmem:[#allocation10 + $0x6e0] sm:$0xff] }
 0x1ad   :  { %v4507_v30 = vcombine.low %v489_v13, %v493_v14 }
 0x1ae   :  { %3453 = vmatpush1.bf16.msra.mxu0 %v4451_v25  ;;  %3617 = vmatpush1.bf16.msra.mxu1 %v4453_v3  ;;  %v4508_v25 = vcombine.high %v489_v13, %v493_v14  ;;  %v4510_v3 = vcombine.high %v490_v16, %v494_v20  ;;  %v538_v13 = vld [vmem:[#allocation10 + $0x848] sm:$0xff]  ;;  %v5195_v20 = vcombine.high %v5175_v47, %v5175_v47 }
 0x1af   :  { %3454 = vmatprep.subr.bf16.mxu0 %v4460_v26  ;;  %3618 = vmatprep.subr.bf16.mxu1 %v4462_v27  ;;  %v497_v26 = vld [vmem:[#allocation10 + $0x700] sm:$0xff]  ;;  %v542_v14 = vld [vmem:[#allocation10 + $0x868] sm:$0xff] }
 0x1b0   :  { %v501_v27 = vld [vmem:[#allocation10 + $0x720] sm:$0xff] }
 0x1b1   :  { %v4515_v38 = vcombine.low %v497_v26, %v501_v27 }
 0x1b2   :  { %3455 = vmatpush1.bf16.msra.mxu0 %v4459_v32  ;;  %3619 = vmatpush1.bf16.msra.mxu1 %v4461_v33  ;;  %v4516_v32 = vcombine.high %v497_v26, %v501_v27  ;;  %v4518_v33 = vcombine.high %v498_v28, %v502_v29  ;;  %v549_v26 = vld [vmem:[#allocation10 + $0x8a0] sm:$0xff]  ;;  %v546_v27 = vld [vmem:[#allocation10 + $0x888] sm:$0xff] }
 0x1b3   :  { %3456 = vmatprep.subr.bf16.mxu0 %v4468_v34  ;;  %3620 = vmatprep.subr.bf16.mxu1 %v4470_v35  ;;  %v505_v34 = vld [vmem:[#allocation10 + $0x740] sm:$0xff]  ;;  %v550_v28 = vld [vmem:[#allocation10 + $0x8a8] sm:$0xff] }
 0x1b4   :  { %v509_v35 = vld [vmem:[#allocation10 + $0x760] sm:$0xff] }
 0x1b5   :  { %v4523_v54 = vcombine.low %v505_v34, %v509_v35 }
 0x1b6   :  { %3457 = vmatpush1.bf16.msra.mxu0 %v4467_v40  ;;  %3621 = vmatpush1.bf16.msra.mxu1 %v4469_v41  ;;  %v4524_v40 = vcombine.high %v505_v34, %v509_v35  ;;  %v4526_v41 = vcombine.high %v506_v36, %v510_v37  ;;  %v557_v34 = vld [vmem:[#allocation10 + $0x8e0] sm:$0xff]  ;;  %v554_v35 = vld [vmem:[#allocation10 + $0x8c8] sm:$0xff] }
 0x1b7   :  { %3458 = vmatprep.subr.bf16.mxu0 %v4476_v42  ;;  %3622 = vmatprep.subr.bf16.mxu1 %v4478_v43  ;;  %v513_v42 = vld [vmem:[#allocation10 + $0x780] sm:$0xff]  ;;  %v558_v36 = vld [vmem:[#allocation10 + $0x8e8] sm:$0xff] }
 0x1b8   :  { %v517_v43 = vld [vmem:[#allocation10 + $0x7a0] sm:$0xff] }
 0x1b9   :  { %v4531_v1 = vcombine.low %v513_v42, %v517_v43 }
 0x1ba   :  { %3459 = vmatpush1.bf16.msra.mxu0 %v4475_v59  ;;  %3623 = vmatpush1.bf16.msra.mxu1 %v4477_v60  ;;  %v4532_v59 = vcombine.high %v513_v42, %v517_v43  ;;  %v4534_v60 = vcombine.high %v514_v48, %v518_v50  ;;  %v565_v42 = vld [vmem:[#allocation10 + $0x920] sm:$0xff]  ;;  %v562_v43 = vld [vmem:[#allocation10 + $0x908] sm:$0xff] }
 0x1bb   :  { %3460 = vmatprep.subr.bf16.mxu0 %v4484_v61  ;;  %3624 = vmatprep.subr.bf16.mxu1 %v4486_v62  ;;  %v521_v61 = vld [vmem:[#allocation10 + $0x7c0] sm:$0xff]  ;;  %v566_v48 = vld [vmem:[#allocation10 + $0x928] sm:$0xff] }
 0x1bc   :  { %v525_v62 = vld [vmem:[#allocation10 + $0x7e0] sm:$0xff] }
 0x1bd   :  { %v4539_v56 = vcombine.low %v521_v61, %v525_v62 }
 0x1be   :  { %3461 = vmatpush1.bf16.msra.mxu0 %v4483_v4  ;;  %3625 = vmatpush1.bf16.msra.mxu1 %v4485_v8  ;;  %v4540_v4 = vcombine.high %v521_v61, %v525_v62  ;;  %v4542_v8 = vcombine.high %v522_v63, %v526_v0  ;;  %v573_v61 = vld [vmem:[#allocation10 + $0x960] sm:$0xff]  ;;  %v570_v62 = vld [vmem:[#allocation10 + $0x948] sm:$0xff] }
 0x1bf   :  { %3462 = vmatprep.subr.bf16.mxu0 %v4492_v51  ;;  %3626 = vmatprep.subr.bf16.mxu1 %v4494_v52  ;;  %v529_v51 = vld [vmem:[#allocation10 + $0x800] sm:$0xff]  ;;  %v574_v63 = vld [vmem:[#allocation10 + $0x968] sm:$0xff] }
 0x1c0   :  { %v533_v52 = vld [vmem:[#allocation10 + $0x820] sm:$0xff] }
 0x1c1   :  { %v4547_v16 = vcombine.low %v529_v51, %v533_v52 }
 0x1c2   :  { %3463 = vmatpush1.bf16.msra.mxu0 %v4491_v9  ;;  %3627 = vmatpush1.bf16.msra.mxu1 %v4493_v10  ;;  %v4548_v9 = vcombine.high %v529_v51, %v533_v52  ;;  %v4550_v10 = vcombine.high %v530_v53, %v534_v55  ;;  %v581_v51 = vld [vmem:[#allocation10 + $0x9a0] sm:$0xff]  ;;  %v578_v52 = vld [vmem:[#allocation10 + $0x988] sm:$0xff] }
 0x1c3   :  { %3464 = vmatprep.subr.bf16.mxu0 %v4500_v11  ;;  %3628 = vmatprep.subr.bf16.mxu1 %v4502_v12  ;;  %v537_v11 = vld [vmem:[#allocation10 + $0x840] sm:$0xff] }
 0x1c4   :  { %v541_v12 = vld [vmem:[#allocation10 + $0x860] sm:$0xff] }
 0x1c5   :  { %v4555_v29 = vcombine.low %v537_v11, %v541_v12 }
 0x1c6   :  { %3465 = vmatpush1.bf16.msra.mxu0 %v4499_v23  ;;  %3629 = vmatpush1.bf16.msra.mxu1 %v4501_v24  ;;  %v4549_v23 = vcombine.low %v530_v53, %v534_v55  ;;  %v4556_v24 = vcombine.high %v537_v11, %v541_v12  ;;  %v582_v53 = vld [vmem:[#allocation10 + $0x9a8] sm:$0xff]  ;;  %v589_v11 = vld [vmem:[#allocation10 + $0x9e0] sm:$0xff] }
 0x1c7   :  { %3466 = vmatprep.subr.bf16.mxu0 %v4508_v25  ;;  %3630 = vmatprep.subr.bf16.mxu1 %v4510_v3  ;;  %v4558_v25 = vcombine.high %v538_v13, %v542_v14  ;;  %v545_v3 = vld [vmem:[#allocation10 + $0x880] sm:$0xff]  ;;  %v586_v12 = vld [vmem:[#allocation10 + $0x9c8] sm:$0xff] }
 0x1c8   :  { %v4563_v37 = vcombine.low %v545_v3, %v549_v26 }
 0x1ca   :  { %3467 = vmatpush1.bf16.msra.mxu0 %v4507_v30  ;;  %3631 = vmatpush1.bf16.msra.mxu1 %v4509_v31  ;;  %v4557_v30 = vcombine.low %v538_v13, %v542_v14  ;;  %v4564_v31 = vcombine.high %v545_v3, %v549_v26  ;;  %v590_v13 = vld [vmem:[#allocation10 + $0x9e8] sm:$0xff]  ;;  %v597_v3 = vld [vmem:[#allocation10 + $0xa20] sm:$0xff] }
 0x1cb   :  { %3468 = vmatprep.subr.bf16.mxu0 %v4516_v32  ;;  %3632 = vmatprep.subr.bf16.mxu1 %v4518_v33  ;;  %v4566_v32 = vcombine.high %v546_v27, %v550_v28  ;;  %v553_v33 = vld [vmem:[#allocation10 + $0x8c0] sm:$0xff]  ;;  %v594_v26 = vld [vmem:[#allocation10 + $0xa08] sm:$0xff] }
 0x1cc   :  { %v4571_v50 = vcombine.low %v553_v33, %v557_v34 }
 0x1ce   :  { %3469 = vmatpush1.bf16.msra.mxu0 %v4515_v38  ;;  %3633 = vmatpush1.bf16.msra.mxu1 %v4517_v39  ;;  %v4565_v38 = vcombine.low %v546_v27, %v550_v28  ;;  %v4572_v39 = vcombine.high %v553_v33, %v557_v34  ;;  %v598_v27 = vld [vmem:[#allocation10 + $0xa28] sm:$0xff]  ;;  %v605_v33 = vld [vmem:[#allocation10 + $0xa60] sm:$0xff] }
 0x1cf   :  { %3470 = vmatprep.subr.bf16.mxu0 %v4524_v40  ;;  %3634 = vmatprep.subr.bf16.mxu1 %v4526_v41  ;;  %v4574_v40 = vcombine.high %v554_v35, %v558_v36  ;;  %v561_v41 = vld [vmem:[#allocation10 + $0x900] sm:$0xff]  ;;  %v602_v34 = vld [vmem:[#allocation10 + $0xa48] sm:$0xff] }
 0x1d0   :  { %v4579_v0 = vcombine.low %v561_v41, %v565_v42 }
 0x1d2   :  { %3471 = vmatpush1.bf16.msra.mxu0 %v4523_v54  ;;  %3635 = vmatpush1.bf16.msra.mxu1 %v4525_v58  ;;  %v4573_v54 = vcombine.low %v554_v35, %v558_v36  ;;  %v4580_v58 = vcombine.high %v561_v41, %v565_v42  ;;  %v606_v35 = vld [vmem:[#allocation10 + $0xa68] sm:$0xff]  ;;  %v613_v41 = vld [vmem:[#allocation10 + $0xaa0] sm:$0xff] }
 0x1d3   :  { %3472 = vmatprep.subr.bf16.mxu0 %v4532_v59  ;;  %3636 = vmatprep.subr.bf16.mxu1 %v4534_v60  ;;  %v4582_v59 = vcombine.high %v562_v43, %v566_v48  ;;  %v569_v60 = vld [vmem:[#allocation10 + $0x940] sm:$0xff]  ;;  %v610_v42 = vld [vmem:[#allocation10 + $0xa88] sm:$0xff] }
 0x1d4   :  { %v4587_v55 = vcombine.low %v569_v60, %v573_v61 }
 0x1d6   :  { %3473 = vmatpush1.bf16.msra.mxu0 %v4531_v1  ;;  %3637 = vmatpush1.bf16.msra.mxu1 %v4533_v2  ;;  %v4581_v1 = vcombine.low %v562_v43, %v566_v48  ;;  %v4588_v2 = vcombine.high %v569_v60, %v573_v61  ;;  %v614_v43 = vld [vmem:[#allocation10 + $0xaa8] sm:$0xff]  ;;  %v621_v60 = vld [vmem:[#allocation10 + $0xae0] sm:$0xff] }
 0x1d7   :  { %3474 = vmatprep.subr.bf16.mxu0 %v4540_v4  ;;  %3638 = vmatprep.subr.bf16.mxu1 %v4542_v8  ;;  %v4590_v4 = vcombine.high %v570_v62, %v574_v63  ;;  %v577_v8 = vld [vmem:[#allocation10 + $0x980] sm:$0xff]  ;;  %v618_v61 = vld [vmem:[#allocation10 + $0xac8] sm:$0xff] }
 0x1d8   :  { %v4595_v14 = vcombine.low %v577_v8, %v581_v51 }
 0x1da   :  { %3475 = vmatpush1.bf16.msra.mxu0 %v4539_v56  ;;  %3639 = vmatpush1.bf16.msra.mxu1 %v4541_v57  ;;  %v4589_v56 = vcombine.low %v570_v62, %v574_v63  ;;  %v4596_v57 = vcombine.high %v577_v8, %v581_v51  ;;  %v622_v62 = vld [vmem:[#allocation10 + $0xae8] sm:$0xff]  ;;  %v629_v8 = vld [vmem:[#allocation10 + $0xb20] sm:$0xff] }
 0x1db   :  { %3485 = vmatprep.subr.bf16.mxu0 %v4548_v9  ;;  %3649 = vmatprep.subr.bf16.mxu1 %v4550_v10  ;;  %v4598_v9 = vcombine.high %v578_v52, %v582_v53  ;;  %v585_v10 = vld [vmem:[#allocation10 + $0x9c0] sm:$0xff]  ;;  %v626_v51 = vld [vmem:[#allocation10 + $0xb08] sm:$0xff] }
 0x1dc   :  { %v4603_v28 = vcombine.low %v585_v10, %v589_v11 }
 0x1dd   :  { %3477 = vmatmul.mubr.bf16.vlgmr.msra.gmra.mrb[0].mxu0 %v5195_v20  ;;  %3641 = vmatmul.mubr.bf16.vlgmr.msra.gmra.mrb[0].mxu1 %v5195_v20 }
 0x1de   :  { %3486 = vmatpush1.bf16.msra.mxu0 %v4547_v16  ;;  %3517 = vmatprep.mubr.bf16.mxu0 %v5173_v46  ;;  %v4597_v16 = vcombine.low %v578_v52, %v582_v53  ;;  %v630_v52 = vld [vmem:[#allocation10 + $0xb28] sm:$0xff] }
 0x1df   :  { %3650 = vmatpush1.bf16.msra.mxu1 %v4549_v23  ;;  %3681 = vmatprep.mubr.bf16.mxu1 %v5173_v46  ;;  %v4604_v23 = vcombine.high %v585_v10, %v589_v11  ;;  %v637_v10 = vld [vmem:[#allocation10 + $0xb60] sm:$0xff]  ;;  %v634_v11 = vld [vmem:[#allocation10 + $0xb48] sm:$0xff] }
 0x1e0   :  { %3487 = vmatprep.subr.bf16.mxu0 %v4556_v24  ;;  %3651 = vmatprep.subr.bf16.mxu1 %v4558_v25  ;;  %v4606_v24 = vcombine.high %v586_v12, %v590_v13  ;;  %v593_v25 = vld [vmem:[#allocation10 + $0xa00] sm:$0xff] }
 0x1e1   :  { %v4611_v36 = vcombine.low %v593_v25, %v597_v3 }
 0x1e2   :  { %3488 = vmatpush1.bf16.msra.mxu0 %v4555_v29  ;;  %v4605_v29 = vcombine.low %v586_v12, %v590_v13  ;;  %v638_v12 = vld [vmem:[#allocation10 + $0xb68] sm:$0xff] }
 0x1e3   :  { %3652 = vmatpush1.bf16.msra.mxu1 %v4557_v30  ;;  %3489 = vmatprep.subr.bf16.mxu0 %v4564_v31  ;;  %v4612_v30 = vcombine.high %v593_v25, %v597_v3  ;;  %v4614_v31 = vcombine.high %v594_v26, %v598_v27  ;;  %v645_v25 = vld [vmem:[#allocation10 + $0xba0] sm:$0xff]  ;;  %v642_v3 = vld [vmem:[#allocation10 + $0xb88] sm:$0xff] }
 0x1e4   :  { %3653 = vmatprep.subr.bf16.mxu1 %v4566_v32  ;;  %v601_v32 = vld [vmem:[#allocation10 + $0xa40] sm:$0xff] }
 0x1e5   :  { %v4619_v48 = vcombine.low %v601_v32, %v605_v33 }
 0x1e6   :  { %3490 = vmatpush1.bf16.msra.mxu0 %v4563_v37  ;;  %v4613_v37 = vcombine.low %v594_v26, %v598_v27  ;;  %v646_v26 = vld [vmem:[#allocation10 + $0xba8] sm:$0xff] }
 0x1e7   :  { %3654 = vmatpush1.bf16.msra.mxu1 %v4565_v38  ;;  %3491 = vmatprep.subr.bf16.mxu0 %v4572_v39  ;;  %v4620_v38 = vcombine.high %v601_v32, %v605_v33  ;;  %v4622_v39 = vcombine.high %v602_v34, %v606_v35  ;;  %v653_v32 = vld [vmem:[#allocation10 + $0xbe0] sm:$0xff]  ;;  %v650_v33 = vld [vmem:[#allocation10 + $0xbc8] sm:$0xff] }
 0x1e8   :  { %3655 = vmatprep.subr.bf16.mxu1 %v4574_v40  ;;  %v609_v40 = vld [vmem:[#allocation10 + $0xa80] sm:$0xff] }
 0x1e9   :  { %v4627_v63 = vcombine.low %v609_v40, %v613_v41 }
 0x1ea   :  { %3492 = vmatpush1.bf16.msra.mxu0 %v4571_v50  ;;  %v4621_v50 = vcombine.low %v602_v34, %v606_v35  ;;  %v654_v34 = vld [vmem:[#allocation10 + $0xbe8] sm:$0xff] }
 0x1eb   :  { %3656 = vmatpush1.bf16.msra.mxu1 %v4573_v54  ;;  %3493 = vmatprep.subr.bf16.mxu0 %v4580_v58  ;;  %v4628_v54 = vcombine.high %v609_v40, %v613_v41  ;;  %v4630_v58 = vcombine.high %v610_v42, %v614_v43  ;;  %v661_v40 = vld [vmem:[#allocation10 + $0xc20] sm:$0xff]  ;;  %v658_v41 = vld [vmem:[#allocation10 + $0xc08] sm:$0xff] }
 0x1ec   :  { %3657 = vmatprep.subr.bf16.mxu1 %v4582_v59  ;;  %v617_v59 = vld [vmem:[#allocation10 + $0xac0] sm:$0xff] }
 0x1ed   :  { %v4635_v53 = vcombine.low %v617_v59, %v621_v60 }
 0x1ee   :  { %3494 = vmatpush1.bf16.msra.mxu0 %v4579_v0  ;;  %v4629_v0 = vcombine.low %v610_v42, %v614_v43  ;;  %v662_v42 = vld [vmem:[#allocation10 + $0xc28] sm:$0xff] }
 0x1ef   :  { %3658 = vmatpush1.bf16.msra.mxu1 %v4581_v1  ;;  %3495 = vmatprep.subr.bf16.mxu0 %v4588_v2  ;;  %v4636_v1 = vcombine.high %v617_v59, %v621_v60  ;;  %v4638_v2 = vcombine.high %v618_v61, %v622_v62  ;;  %v669_v59 = vld [vmem:[#allocation10 + $0xc60] sm:$0xff] }
 0x1f0   :  { %3659 = vmatprep.subr.bf16.mxu1 %v4590_v4  ;;  %v625_v4 = vld [vmem:[#allocation10 + $0xb00] sm:$0xff] }
 0x1f1   :  { %v4643_v13 = vcombine.low %v625_v4, %v629_v8 }
 0x1f2   :  { %3496 = vmatpush1.bf16.msra.mxu0 %v4587_v55  ;;  %v4637_v55 = vcombine.low %v618_v61, %v622_v62  ;;  %v666_v61 = vld [vmem:[#allocation10 + $0xc48] sm:$0xff] }
 0x1f3   :  { %3660 = vmatpush1.bf16.msra.mxu1 %v4589_v56  ;;  %3497 = vmatprep.subr.bf16.mxu0 %v4596_v57  ;;  %v4644_v56 = vcombine.high %v625_v4, %v629_v8  ;;  %v4646_v57 = vcombine.high %v626_v51, %v630_v52  ;;  %v670_v62 = vld [vmem:[#allocation10 + $0xc68] sm:$0xff]  ;;  %v5204_v4 = vcombine.high %v5173_v46, %v5173_v46 }
 0x1f4   :  { %3661 = vmatprep.subr.bf16.mxu1 %v4598_v9  ;;  %v633_v9 = vld [vmem:[#allocation10 + $0xb40] sm:$0xff]  ;;  %v4686_v8 = vcombine.high %v666_v61, %v670_v62 }
 0x1f5   :  { %v4651_v27 = vcombine.low %v633_v9, %v637_v10 }
 0x1f6   :  { %3498 = vmatpush1.bf16.msra.mxu0 %v4595_v14  ;;  %v4645_v14 = vcombine.low %v626_v51, %v630_v52  ;;  %v674_v51 = vld [vmem:[#allocation10 + $0xc88] sm:$0xff] }
 0x1f7   :  { %3662 = vmatpush1.bf16.msra.mxu1 %v4597_v16  ;;  %3499 = vmatprep.subr.bf16.mxu0 %v4604_v23  ;;  %v4652_v16 = vcombine.high %v633_v9, %v637_v10  ;;  %v4654_v23 = vcombine.high %v634_v11, %v638_v12  ;;  %v678_v52 = vld [vmem:[#allocation10 + $0xca8] sm:$0xff]  ;;  %v681_v9 = vld [vmem:[#allocation10 + $0xcc0] sm:$0xff] }
 0x1f8   :  { %3663 = vmatprep.subr.bf16.mxu1 %v4606_v24  ;;  %v641_v24 = vld [vmem:[#allocation10 + $0xb80] sm:$0xff] }
 0x1f9   :  { %v4659_v35 = vcombine.low %v641_v24, %v645_v25  ;;  %v685_v10 = vld [vmem:[#allocation10 + $0xce0] sm:$0xff] }
 0x1fa   :  { %3500 = vmatpush1.bf16.msra.mxu0 %v4603_v28  ;;  %v4653_v28 = vcombine.low %v634_v11, %v638_v12  ;;  %v682_v11 = vld [vmem:[#allocation10 + $0xcc8] sm:$0xff] }
 0x1fb   :  { %3664 = vmatpush1.bf16.msra.mxu1 %v4605_v29  ;;  %3501 = vmatprep.subr.bf16.mxu0 %v4612_v30  ;;  %v4660_v29 = vcombine.high %v641_v24, %v645_v25  ;;  %v4662_v30 = vcombine.high %v642_v3, %v646_v26  ;;  %v686_v12 = vld [vmem:[#allocation10 + $0xce8] sm:$0xff]  ;;  %v689_v24 = vld [vmem:[#allocation10 + $0xd00] sm:$0xff] }
 0x1fc   :  { %3665 = vmatprep.subr.bf16.mxu1 %v4614_v31  ;;  %v649_v31 = vld [vmem:[#allocation10 + $0xbc0] sm:$0xff] }
 0x1fd   :  { %v4667_v43 = vcombine.low %v649_v31, %v653_v32  ;;  %v693_v25 = vld [vmem:[#allocation10 + $0xd20] sm:$0xff] }
 0x1fe   :  { %3502 = vmatpush1.bf16.msra.mxu0 %v4611_v36  ;;  %v4661_v36 = vcombine.low %v642_v3, %v646_v26  ;;  %v690_v3 = vld [vmem:[#allocation10 + $0xd08] sm:$0xff] }
 0x1ff   :  { %3666 = vmatpush1.bf16.msra.mxu1 %v4613_v37  ;;  %3503 = vmatprep.subr.bf16.mxu0 %v4620_v38  ;;  %v4668_v37 = vcombine.high %v649_v31, %v653_v32  ;;  %v4670_v38 = vcombine.high %v650_v33, %v654_v34  ;;  %v694_v26 = vld [vmem:[#allocation10 + $0xd28] sm:$0xff]  ;;  %v697_v31 = vld [vmem:[#allocation10 + $0xd40] sm:$0xff] }
 0x200   :  { %3667 = vmatprep.subr.bf16.mxu1 %v4622_v39  ;;  %v657_v39 = vld [vmem:[#allocation10 + $0xc00] sm:$0xff] }
 0x201   :  { %v4675_v60 = vcombine.low %v657_v39, %v661_v40  ;;  %v701_v32 = vld [vmem:[#allocation10 + $0xd60] sm:$0xff] }
 0x202   :  { %3504 = vmatpush1.bf16.msra.mxu0 %v4619_v48  ;;  %v4669_v48 = vcombine.low %v650_v33, %v654_v34  ;;  %v698_v33 = vld [vmem:[#allocation10 + $0xd48] sm:$0xff] }
 0x203   :  { %3668 = vmatpush1.bf16.msra.mxu1 %v4621_v50  ;;  %3505 = vmatprep.subr.bf16.mxu0 %v4628_v54  ;;  %v4676_v50 = vcombine.high %v657_v39, %v661_v40  ;;  %v4678_v54 = vcombine.high %v658_v41, %v662_v42  ;;  %v702_v34 = vld [vmem:[#allocation10 + $0xd68] sm:$0xff]  ;;  %v705_v39 = vld [vmem:[#allocation10 + $0xd80] sm:$0xff] }
 0x204   :  { %3669 = vmatprep.subr.bf16.mxu1 %v4630_v58  ;;  %v665_v58 = vld [vmem:[#allocation10 + $0xc40] sm:$0xff] }
 0x205   :  { %v709_v40 = vld [vmem:[#allocation10 + $0xda0] sm:$0xff] }
 0x206   :  { %3506 = vmatpush1.bf16.msra.mxu0 %v4627_v63  ;;  %v4677_v63 = vcombine.low %v658_v41, %v662_v42  ;;  %v706_v41 = vld [vmem:[#allocation10 + $0xd88] sm:$0xff] }
 0x207   :  { %3670 = vmatpush1.bf16.msra.mxu1 %v4629_v0  ;;  %3507 = vmatprep.subr.bf16.mxu0 %v4636_v1  ;;  %v4684_v0 = vcombine.high %v665_v58, %v669_v59  ;;  %v673_v1 = vld [vmem:[#allocation10 + $0xc80] sm:$0xff]  ;;  %v710_v42 = vld [vmem:[#allocation10 + $0xda8] sm:$0xff] }
 0x208   :  { %3671 = vmatprep.subr.bf16.mxu1 %v4638_v2  ;;  %v677_v2 = vld [vmem:[#allocation10 + $0xca0] sm:$0xff] }
 0x20a   :  { %3508 = vmatpush1.bf16.msra.mxu0 %v4635_v53  ;;  %v4683_v53 = vcombine.low %v665_v58, %v669_v59  ;;  %v713_v58 = vld [vmem:[#allocation10 + $0xdc0] sm:$0xff] }
 0x20b   :  { %3672 = vmatpush1.bf16.msra.mxu1 %v4637_v55  ;;  %3509 = vmatprep.subr.bf16.mxu0 %v4644_v56  ;;  %v4685_v55 = vcombine.low %v666_v61, %v670_v62  ;;  %v4692_v56 = vcombine.high %v673_v1, %v677_v2  ;;  %v717_v59 = vld [vmem:[#allocation10 + $0xde0] sm:$0xff]  ;;  %v714_v61 = vld [vmem:[#allocation10 + $0xdc8] sm:$0xff] }
 0x20c   :  { %3673 = vmatprep.subr.bf16.mxu1 %v4646_v57  ;;  %v4694_v57 = vcombine.high %v674_v51, %v678_v52  ;;  %v718_v62 = vld [vmem:[#allocation10 + $0xde8] sm:$0xff] }
 0x20e   :  { %3510 = vmatpush1.bf16.msra.mxu0 %v4643_v13  ;;  %v4691_v13 = vcombine.low %v673_v1, %v677_v2  ;;  %v4725_v1 = vcombine.low %v706_v41, %v710_v42  ;;  %v4732_v2 = vcombine.high %v713_v58, %v717_v59 }
 0x20f   :  { %3674 = vmatpush1.bf16.msra.mxu1 %v4645_v14  ;;  %3511 = vmatprep.subr.bf16.mxu0 %v4652_v16  ;;  %v4693_v14 = vcombine.low %v674_v51, %v678_v52  ;;  %v4700_v16 = vcombine.high %v681_v9, %v685_v10  ;;  %v721_v51 = vld [vmem:[#allocation10 + $0xe00] sm:$0xff] }
 0x210   :  { %3675 = vmatprep.subr.bf16.mxu1 %v4654_v23  ;;  %v4702_v23 = vcombine.high %v682_v11, %v686_v12  ;;  %v725_v52 = vld [vmem:[#allocation10 + $0xe20] sm:$0xff] }
 0x212   :  { %3512 = vmatpush1.bf16.msra.mxu0 %v4651_v27  ;;  %v4699_v27 = vcombine.low %v681_v9, %v685_v10  ;;  %v4733_v9 = vcombine.low %v714_v61, %v718_v62  ;;  %v4740_v10 = vcombine.high %v721_v51, %v725_v52 }
 0x213   :  { %3676 = vmatpush1.bf16.msra.mxu1 %v4653_v28  ;;  %3513 = vmatprep.subr.bf16.mxu0 %v4660_v29  ;;  %v4701_v28 = vcombine.low %v682_v11, %v686_v12  ;;  %v4708_v29 = vcombine.high %v689_v24, %v693_v25  ;;  %v729_v12 = vld [vmem:[#allocation10 + $0xe40] sm:$0xff] }
 0x214   :  { %3677 = vmatprep.subr.bf16.mxu1 %v4662_v30  ;;  %v4710_v30 = vcombine.high %v690_v3, %v694_v26 }
 0x216   :  { %3514 = vmatpush1.bf16.msra.mxu0 %v4659_v35  ;;  %v4707_v35 = vcombine.low %v689_v24, %v693_v25 }
 0x217   :  { %3678 = vmatpush1.bf16.msra.mxu1 %v4661_v36  ;;  %3515 = vmatprep.subr.bf16.mxu0 %v4668_v37  ;;  %v4709_v36 = vcombine.low %v690_v3, %v694_v26  ;;  %v4716_v37 = vcombine.high %v697_v31, %v701_v32  ;;  %v737_v26 = vld [vmem:[#allocation10 + $0xe80] sm:$0xff] }
 0x218   :  { %3679 = vmatprep.subr.bf16.mxu1 %v4670_v38  ;;  %v4718_v38 = vcombine.high %v698_v33, %v702_v34 }
 0x21a   :  { %3516 = vmatpush1.bf16.msra.mxu0 %v4667_v43  ;;  %v4715_v43 = vcombine.low %v697_v31, %v701_v32 }
 0x21b   :  { %3680 = vmatpush1.bf16.msra.mxu1 %v4669_v48  ;;  %3526 = vmatprep.subr.bf16.mxu0 %v4676_v50  ;;  %v4717_v48 = vcombine.low %v698_v33, %v702_v34  ;;  %v4724_v50 = vcombine.high %v705_v39, %v709_v40  ;;  %v745_v34 = vld [vmem:[#allocation10 + $0xec0] sm:$0xff] }
 0x21c   :  { %3690 = vmatprep.subr.bf16.mxu1 %v4678_v54  ;;  %v4726_v54 = vcombine.high %v706_v41, %v710_v42  ;;  %v753_v42 = vld [vmem:[#allocation10 + $0xf00] sm:$0xff] }
 0x21d   :  { %3518 = vmatmul.mubr.bf16.vlgmr.msra.gmra.mrb[0].mxu0 %v5169_v44 }
 0x21e   :  { %3682 = vmatmul.mubr.bf16.vlgmr.msra.gmra.mrb[0].mxu1 %v5169_v44  ;;  %3527 = vmatpush1.bf16.msra.mxu0 %v4675_v60  ;;  %v5005_v60 = vmov 2  }
 0x21f   :  { %3558 = vmatprep.mubr.bf16.mxu0 %v5204_v4  ;;  %3691 = vmatpush1.bf16.msra.mxu1 %v4677_v63  ;;  %v4875_v63 = vld [vmem:[#allocation9] sm:$0x3] }
 0x220   :  { %3722 = vmatprep.mubr.bf16.mxu1 %v5204_v4  ;;  %3528 = vmatprep.subr.bf16.mxu0 %v4684_v0  ;;  %v4723_v0 = vcombine.low %v705_v39, %v709_v40 }
 0x221   :  { %3692 = vmatprep.subr.bf16.mxu1 %v4686_v8  ;;  %4868 = vset.pattern.permute.xlu1 %v5005_v60  ;;  %v4734_v8 = vcombine.high %v714_v61, %v718_v62  ;;  %v761_v61 = vld [vmem:[#allocation10 + $0xf40] sm:$0xff] }
 0x222   :  { %3529 = vmatpush1.bf16.msra.mxu0 %v4683_v53  ;;  %4129 = vperm.xlu1 %4868, %v4875_v63   ;;  %v722_v53 = vld [vmem:[#allocation10 + $0xe08] sm:$0xff]  ;;  %v765_v62 = vld [vmem:[#allocation10 + $0xf60] sm:$0xff] }
 0x223   :  { %3693 = vmatpush1.bf16.msra.mxu1 %v4685_v55  ;;  %3530 = vmatprep.subr.bf16.mxu0 %v4692_v56  ;;  %v726_v55 = vld [vmem:[#allocation10 + $0xe28] sm:$0xff]  ;;  %v5006_v56 = vmov 3  }
 0x224   :  { %3694 = vmatprep.subr.bf16.mxu1 %v4694_v57  ;;  %4870 = vset.pattern.permute.xlu0 %v5006_v56  ;;  %v4731_v57 = vcombine.low %v713_v58, %v717_v59  ;;  %v4742_v11 = vcombine.high %v722_v53, %v726_v55  ;;  %v4741_v24 = vcombine.low %v722_v53, %v726_v55  ;;  %v773_v53 = vld [vmem:[#allocation10 + $0xfa0] sm:$0xff]  ;;  %v770_v55 = vld [vmem:[#allocation10 + $0xf88] sm:$0xff] }
 0x226   :  { %3531 = vmatpush1.bf16.msra.mxu0 %v4691_v13  ;;  %4869 = vset.pattern.permute.xlu1 %v5006_v56  ;;  %v733_v13 = vld [vmem:[#allocation10 + $0xe60] sm:$0xff]  ;;  %v774_v56 = vld [vmem:[#allocation10 + $0xfa8] sm:$0xff] }
 0x227   :  { %3695 = vmatpush1.bf16.msra.mxu1 %v4693_v14  ;;  %3532 = vmatprep.subr.bf16.mxu0 %v4700_v16  ;;  %v730_v14 = vld [vmem:[#allocation10 + $0xe48] sm:$0xff]  ;;  %v4748_v25 = vcombine.high %v729_v12, %v733_v13 }
 0x228   :  { %3696 = vmatprep.subr.bf16.mxu1 %v4702_v23  ;;  %4201 = vperm.xlu1 %4869, %v4875_v63   ;;  %v734_v16 = vld [vmem:[#allocation10 + $0xe68] sm:$0xff]  ;;  %v4739_v23 = vcombine.low %v721_v51, %v725_v52  ;;  %v769_v52 = vld [vmem:[#allocation10 + $0xf80] sm:$0xff] }
 0x229   :  { %v4750_v3 = vcombine.high %v730_v14, %v734_v16  ;;  %v4749_v31 = vcombine.low %v730_v14, %v734_v16  ;;  %v762_v63 = vld [vmem:[#allocation10 + $0xf48] sm:$0xff] }
 0x22a   :  { %3533 = vmatpush1.bf16.msra.mxu0 %v4699_v27  ;;  %v741_v27 = vld [vmem:[#allocation10 + $0xea0] sm:$0xff]  ;;  %v778_v14 = vld [vmem:[#allocation10 + $0xfc8] sm:$0xff] }
 0x22b   :  { %3697 = vmatpush1.bf16.msra.mxu1 %v4701_v28  ;;  %3534 = vmatprep.subr.bf16.mxu0 %v4708_v29  ;;  %v738_v28 = vld [vmem:[#allocation10 + $0xe88] sm:$0xff]  ;;  %v4756_v32 = vcombine.high %v737_v26, %v741_v27 }
 0x22c   :  { %3698 = vmatprep.subr.bf16.mxu1 %v4710_v30  ;;  %v742_v29 = vld [vmem:[#allocation10 + $0xea8] sm:$0xff]  ;;  %v4747_v30 = vcombine.low %v729_v12, %v733_v13  ;;  %v777_v12 = vld [vmem:[#allocation10 + $0xfc0] sm:$0xff] }
 0x22d   :  { %v4758_v33 = vcombine.high %v738_v28, %v742_v29  ;;  %v4757_v39 = vcombine.low %v738_v28, %v742_v29  ;;  %v781_v13 = vld [vmem:[#allocation10 + $0xfe0] sm:$0xff]  ;;  %v782_v16 = vld [vmem:[#allocation10 + $0xfe8] sm:$0xff]  ;;  %v276_v28 = vld [vmem:[#allocation10 + $0x18] sm:$0xff] }
 0x22e   :  { %3535 = vmatpush1.bf16.msra.mxu0 %v4707_v35  ;;  %v749_v35 = vld [vmem:[#allocation10 + $0xee0] sm:$0xff]  ;;  %v280_v29 = vld [vmem:[#allocation10 + $0x38] sm:$0xff] }
 0x22f   :  { %3699 = vmatpush1.bf16.msra.mxu1 %v4709_v36  ;;  %3536 = vmatprep.subr.bf16.mxu0 %v4716_v37  ;;  %v746_v36 = vld [vmem:[#allocation10 + $0xec8] sm:$0xff]  ;;  %v4764_v40 = vcombine.high %v745_v34, %v749_v35 }
 0x230   :  { %3700 = vmatprep.subr.bf16.mxu1 %v4718_v38  ;;  %v750_v37 = vld [vmem:[#allocation10 + $0xee8] sm:$0xff]  ;;  %v4755_v38 = vcombine.low %v737_v26, %v741_v27  ;;  %v275_v26 = vld [vmem:[#allocation10 + $0x10] sm:$0xff] }
 0x231   :  { %v4766_v41 = vcombine.high %v746_v36, %v750_v37  ;;  %v4765_v58 = vcombine.low %v746_v36, %v750_v37  ;;  %v279_v27 = vld [vmem:[#allocation10 + $0x30] sm:$0xff]  ;;  %v284_v37 = vld [vmem:[#allocation10 + $0x58] sm:$0xff] }
 0x232   :  { %3537 = vmatpush1.bf16.msra.mxu0 %v4715_v43  ;;  %v757_v43 = vld [vmem:[#allocation10 + $0xf20] sm:$0xff]  ;;  %v4295_v36 = vcombine.low %v275_v26, %v279_v27 }
 0x233   :  { %3701 = vmatpush1.bf16.msra.mxu1 %v4717_v48  ;;  %3538 = vmatprep.subr.bf16.mxu0 %v4724_v50  ;;  %v754_v48 = vld [vmem:[#allocation10 + $0xf08] sm:$0xff]  ;;  %v4772_v59 = vcombine.high %v753_v42, %v757_v43 }
 0x234   :  { %3702 = vmatprep.subr.bf16.mxu1 %v4726_v54  ;;  %v758_v50 = vld [vmem:[#allocation10 + $0xf28] sm:$0xff]  ;;  %v4763_v54 = vcombine.low %v745_v34, %v749_v35  ;;  %v283_v34 = vld [vmem:[#allocation10 + $0x50] sm:$0xff] }
 0x235   :  { %v4774_v60 = vcombine.high %v754_v48, %v758_v50  ;;  %v287_v35 = vld [vmem:[#allocation10 + $0x70] sm:$0xff] }
 0x236   :  { %3539 = vmatpush1.bf16.msra.mxu0 %v4723_v0  ;;  %v766_v0 = vld [vmem:[#allocation10 + $0xf68] sm:$0xff] }
 0x237   :  { %3703 = vmatpush1.bf16.msra.mxu1 %v4725_v1  ;;  %3540 = vmatprep.subr.bf16.mxu0 %v4732_v2  ;;  %v4771_v1 = vcombine.low %v753_v42, %v757_v43  ;;  %v4773_v2 = vcombine.low %v754_v48, %v758_v50  ;;  %v4782_v51 = vcombine.high %v762_v63, %v766_v0  ;;  %v291_v42 = vld [vmem:[#allocation10 + $0x90] sm:$0xff]  ;;  %v292_v50 = vld [vmem:[#allocation10 + $0x98] sm:$0xff] }
 0x238   :  { %3704 = vmatprep.subr.bf16.mxu1 %v4734_v8  ;;  %v4780_v8 = vcombine.high %v761_v61, %v765_v62  ;;  %v295_v43 = vld [vmem:[#allocation10 + $0xb0] sm:$0xff] }
 0x23a   :  { %3541 = vmatpush1.bf16.msra.mxu0 %v4731_v57  ;;  %v4779_v57 = vcombine.low %v761_v61, %v765_v62  ;;  %v299_v62 = vld [vmem:[#allocation10 + $0xd0] sm:$0xff] }
 0x23b   :  { %3705 = vmatpush1.bf16.msra.mxu1 %v4733_v9  ;;  %3542 = vmatprep.subr.bf16.mxu0 %v4740_v10  ;;  %v4781_v9 = vcombine.low %v762_v63, %v766_v0  ;;  %v4788_v10 = vcombine.high %v769_v52, %v773_v53  ;;  %v303_v63 = vld [vmem:[#allocation10 + $0xf0] sm:$0xff]  ;;  %v300_v0 = vld [vmem:[#allocation10 + $0xd8] sm:$0xff] }
 0x23c   :  { %3706 = vmatprep.subr.bf16.mxu1 %v4742_v11  ;;  %v4790_v11 = vcombine.high %v770_v55, %v774_v56 }
 0x23e   :  { %3543 = vmatpush1.bf16.msra.mxu0 %v4739_v23  ;;  %v4787_v23 = vcombine.low %v769_v52, %v773_v53  ;;  %v307_v53 = vld [vmem:[#allocation10 + $0x110] sm:$0xff] }
 0x23f   :  { %3707 = vmatpush1.bf16.msra.mxu1 %v4741_v24  ;;  %3544 = vmatprep.subr.bf16.mxu0 %v4748_v25  ;;  %v4789_v24 = vcombine.low %v770_v55, %v774_v56  ;;  %v4796_v25 = vcombine.high %v777_v12, %v781_v13  ;;  %v311_v55 = vld [vmem:[#allocation10 + $0x130] sm:$0xff]  ;;  %v308_v56 = vld [vmem:[#allocation10 + $0x118] sm:$0xff] }
 0x240   :  { %3708 = vmatprep.subr.bf16.mxu1 %v4750_v3  ;;  %v4798_v3 = vcombine.high %v778_v14, %v782_v16 }
 0x242   :  { %3545 = vmatpush1.bf16.msra.mxu0 %v4747_v30  ;;  %v4795_v30 = vcombine.low %v777_v12, %v781_v13  ;;  %v315_v12 = vld [vmem:[#allocation10 + $0x150] sm:$0xff] }
 0x243   :  { %3709 = vmatpush1.bf16.msra.mxu1 %v4749_v31  ;;  %3546 = vmatprep.subr.bf16.mxu0 %v4756_v32  ;;  %v4797_v31 = vcombine.low %v778_v14, %v782_v16  ;;  %v4296_v32 = vcombine.high %v275_v26, %v279_v27  ;;  %v319_v13 = vld [vmem:[#allocation10 + $0x170] sm:$0xff]  ;;  %v316_v14 = vld [vmem:[#allocation10 + $0x158] sm:$0xff] }
 0x244   :  { %3710 = vmatprep.subr.bf16.mxu1 %v4758_v33  ;;  %v4298_v33 = vcombine.high %v276_v28, %v280_v29  ;;  %v320_v16 = vld [vmem:[#allocation10 + $0x178] sm:$0xff]  ;;  %v323_v26 = vld [vmem:[#allocation10 + $0x190] sm:$0xff] }
 0x245   :  { %v327_v27 = vld [vmem:[#allocation10 + $0x1b0] sm:$0xff] }
 0x246   :  { %3547 = vmatpush1.bf16.msra.mxu0 %v4755_v38  ;;  %v288_v38 = vld [vmem:[#allocation10 + $0x78] sm:$0xff] }
 0x247   :  { %3711 = vmatpush1.bf16.msra.mxu1 %v4757_v39  ;;  %3548 = vmatprep.subr.bf16.mxu0 %v4764_v40  ;;  %v5211_v39 = vcombine.high %v5169_v44, %v5169_v44  ;;  %v4297_v40 = vcombine.low %v276_v28, %v280_v29  ;;  %v4306_v48 = vcombine.high %v284_v37, %v288_v38  ;;  %v324_v28 = vld [vmem:[#allocation10 + $0x198] sm:$0xff] }
 0x248   :  { %3712 = vmatprep.subr.bf16.mxu1 %v4766_v41  ;;  %v4304_v41 = vcombine.high %v283_v34, %v287_v35  ;;  %v328_v29 = vld [vmem:[#allocation10 + $0x1b8] sm:$0xff] }
 0x24a   :  { %3549 = vmatpush1.bf16.msra.mxu0 %v4763_v54  ;;  %v296_v54 = vld [vmem:[#allocation10 + $0xb8] sm:$0xff] }
 0x24b   :  { %3713 = vmatpush1.bf16.msra.mxu1 %v4765_v58  ;;  %3550 = vmatprep.subr.bf16.mxu0 %v4772_v59  ;;  %v4303_v58 = vcombine.low %v283_v34, %v287_v35  ;;  %v4305_v59 = vcombine.low %v284_v37, %v288_v38  ;;  %v4314_v61 = vcombine.high %v292_v50, %v296_v54  ;;  %v331_v34 = vld [vmem:[#allocation10 + $0x1d0] sm:$0xff]  ;;  %v336_v37 = vld [vmem:[#allocation10 + $0x1f8] sm:$0xff] }
 0x24c   :  { %3714 = vmatprep.subr.bf16.mxu1 %v4774_v60  ;;  %v4312_v60 = vcombine.high %v291_v42, %v295_v43  ;;  %v335_v35 = vld [vmem:[#allocation10 + $0x1f0] sm:$0xff]  ;;  %v4343_v38 = vcombine.low %v323_v26, %v327_v27 }
 0x24e   :  { %3551 = vmatpush1.bf16.msra.mxu0 %v4771_v1  ;;  %v304_v1 = vld [vmem:[#allocation10 + $0xf8] sm:$0xff] }
 0x24f   :  { %3715 = vmatpush1.bf16.msra.mxu1 %v4773_v2  ;;  %3552 = vmatprep.subr.bf16.mxu0 %v4780_v8  ;;  %v4311_v2 = vcombine.low %v291_v42, %v295_v43  ;;  %v4313_v8 = vcombine.low %v292_v50, %v296_v54  ;;  %v4322_v52 = vcombine.high %v300_v0, %v304_v1  ;;  %v339_v43 = vld [vmem:[#allocation10 + $0x210] sm:$0xff]  ;;  %v340_v50 = vld [vmem:[#allocation10 + $0x218] sm:$0xff] }
 0x250   :  { %3716 = vmatprep.subr.bf16.mxu1 %v4782_v51  ;;  %v4320_v51 = vcombine.high %v299_v62, %v303_v63  ;;  %v344_v54 = vld [vmem:[#allocation10 + $0x238] sm:$0xff] }
 0x252   :  { %3553 = vmatpush1.bf16.msra.mxu0 %v4779_v57  ;;  %v312_v57 = vld [vmem:[#allocation10 + $0x138] sm:$0xff] }
 0x253   :  { %3717 = vmatpush1.bf16.msra.mxu1 %v4781_v9  ;;  %3554 = vmatprep.subr.bf16.mxu0 %v4788_v10  ;;  %v4321_v9 = vcombine.low %v300_v0, %v304_v1  ;;  %v4328_v10 = vcombine.high %v307_v53, %v311_v55  ;;  %v348_v0 = vld [vmem:[#allocation10 + $0x258] sm:$0xff] }
 0x254   :  { %3718 = vmatprep.subr.bf16.mxu1 %v4790_v11  ;;  %v4330_v11 = vcombine.high %v308_v56, %v312_v57  ;;  %v352_v1 = vld [vmem:[#allocation10 + $0x278] sm:$0xff] }
 0x256   :  { %3555 = vmatpush1.bf16.msra.mxu0 %v4787_v23  ;;  %v4327_v23 = vcombine.low %v307_v53, %v311_v55  ;;  %v355_v53 = vld [vmem:[#allocation10 + $0x290] sm:$0xff] }
 0x257   :  { %3719 = vmatpush1.bf16.msra.mxu1 %v4789_v24  ;;  %3556 = vmatprep.subr.bf16.mxu0 %v4796_v25  ;;  %v4329_v24 = vcombine.low %v308_v56, %v312_v57  ;;  %v4336_v25 = vcombine.high %v315_v12, %v319_v13  ;;  %v359_v55 = vld [vmem:[#allocation10 + $0x2b0] sm:$0xff]  ;;  %v356_v56 = vld [vmem:[#allocation10 + $0x298] sm:$0xff] }
 0x258   :  { %3720 = vmatprep.subr.bf16.mxu1 %v4798_v3  ;;  %v4338_v3 = vcombine.high %v316_v14, %v320_v16  ;;  %v360_v57 = vld [vmem:[#allocation10 + $0x2b8] sm:$0xff] }
 0x25a   :  { %3557 = vmatpush1.bf16.msra.mxu0 %v4795_v30  ;;  %v4335_v30 = vcombine.low %v315_v12, %v319_v13  ;;  %v363_v12 = vld [vmem:[#allocation10 + $0x2d0] sm:$0xff] }
 0x25b   :  { %3721 = vmatpush1.bf16.msra.mxu1 %v4797_v31  ;;  %3731 = vmatprep.subr.bf16.mxu0 %v4296_v32  ;;  %v4337_v31 = vcombine.low %v316_v14, %v320_v16  ;;  %v4344_v32 = vcombine.high %v323_v26, %v327_v27  ;;  %v367_v13 = vld [vmem:[#allocation10 + $0x2f0] sm:$0xff]  ;;  %v364_v14 = vld [vmem:[#allocation10 + $0x2d8] sm:$0xff] }
 0x25c   :  { %3895 = vmatprep.subr.bf16.mxu1 %v4298_v33  ;;  %v4346_v33 = vcombine.high %v324_v28, %v328_v29  ;;  %v368_v16 = vld [vmem:[#allocation10 + $0x2f8] sm:$0xff]  ;;  %v371_v26 = vld [vmem:[#allocation10 + $0x310] sm:$0xff] }
 0x25d   :  { %3559 = vmatmul.mubr.bf16.vlgmr.msra.gmra.mrb[0].mxu0 %v5211_v39  ;;  %v375_v27 = vld [vmem:[#allocation10 + $0x330] sm:$0xff] }
 0x25e   :  { %3723 = vmatmul.mubr.bf16.vlgmr.msra.gmra.mrb[0].mxu1 %v5211_v39  ;;  %3732 = vmatpush1.bf16.msra.mxu0 %v4295_v36  ;;  %v332_v36 = vld [vmem:[#allocation10 + $0x1d8] sm:$0xff] }
 0x25f   :  { %3763 = vmatprep.mubr.bf16.mxu0 %v5171_v45  ;;  %3896 = vmatpush1.bf16.msra.mxu1 %v4297_v40  ;;  %v4345_v40 = vcombine.low %v324_v28, %v328_v29  ;;  %v4354_v42 = vcombine.high %v332_v36, %v336_v37  ;;  %v372_v28 = vld [vmem:[#allocation10 + $0x318] sm:$0xff] }
 0x260   :  { %3927 = vmatprep.mubr.bf16.mxu1 %v5171_v45  ;;  %3733 = vmatprep.subr.bf16.mxu0 %v4304_v41  ;;  %v4319_v45 = vcombine.low %v299_v62, %v303_v63  ;;  %v4352_v41 = vcombine.high %v331_v34, %v335_v35  ;;  %v347_v62 = vld [vmem:[#allocation10 + $0x250] sm:$0xff]  ;;  %v376_v29 = vld [vmem:[#allocation10 + $0x338] sm:$0xff] }
 0x261   :  { %3897 = vmatprep.subr.bf16.mxu1 %v4306_v48  ;;  %v343_v48 = vld [vmem:[#allocation10 + $0x230] sm:$0xff] }
 0x262   :  { %3734 = vmatpush1.bf16.msra.mxu0 %v4303_v58  ;;  %v4351_v58 = vcombine.low %v331_v34, %v335_v35  ;;  %v351_v63 = vld [vmem:[#allocation10 + $0x270] sm:$0xff] }
 0x263   :  { %3898 = vmatpush1.bf16.msra.mxu1 %v4305_v59  ;;  %3735 = vmatprep.subr.bf16.mxu0 %v4312_v60  ;;  %v4353_v59 = vcombine.low %v332_v36, %v336_v37  ;;  %v4360_v60 = vcombine.high %v339_v43, %v343_v48  ;;  %v379_v34 = vld [vmem:[#allocation10 + $0x350] sm:$0xff]  ;;  %v380_v36 = vld [vmem:[#allocation10 + $0x358] sm:$0xff] }
 0x264   :  { %3899 = vmatprep.subr.bf16.mxu1 %v4314_v61  ;;  %v4362_v61 = vcombine.high %v340_v50, %v344_v54  ;;  %v383_v35 = vld [vmem:[#allocation10 + $0x370] sm:$0xff]  ;;  %v384_v37 = vld [vmem:[#allocation10 + $0x378] sm:$0xff] }
 0x266   :  { %3736 = vmatpush1.bf16.msra.mxu0 %v4311_v2  ;;  %v4359_v2 = vcombine.low %v339_v43, %v343_v48  ;;  %v387_v43 = vld [vmem:[#allocation10 + $0x390] sm:$0xff] }
 0x267   :  { %3900 = vmatpush1.bf16.msra.mxu1 %v4313_v8  ;;  %3737 = vmatprep.subr.bf16.mxu0 %v4320_v51  ;;  %v4361_v8 = vcombine.low %v340_v50, %v344_v54  ;;  %v4368_v51 = vcombine.high %v347_v62, %v351_v63  ;;  %v391_v48 = vld [vmem:[#allocation10 + $0x3b0] sm:$0xff]  ;;  %v388_v50 = vld [vmem:[#allocation10 + $0x398] sm:$0xff] }
 0x268   :  { %3901 = vmatprep.subr.bf16.mxu1 %v4322_v52  ;;  %v4370_v52 = vcombine.high %v348_v0, %v352_v1  ;;  %v392_v54 = vld [vmem:[#allocation10 + $0x3b8] sm:$0xff] }
 0x26a   :  { %3738 = vmatpush1.bf16.msra.mxu0 %v4319_v45  ;;  %v4367_v45 = vcombine.low %v347_v62, %v351_v63  ;;  %v395_v62 = vld [vmem:[#allocation10 + $0x3d0] sm:$0xff] }
 0x26b   :  { %3902 = vmatpush1.bf16.msra.mxu1 %v4321_v9  ;;  %3739 = vmatprep.subr.bf16.mxu0 %v4328_v10  ;;  %v4369_v9 = vcombine.low %v348_v0, %v352_v1  ;;  %v4376_v10 = vcombine.high %v355_v53, %v359_v55  ;;  %v399_v63 = vld [vmem:[#allocation10 + $0x3f0] sm:$0xff]  ;;  %v396_v0 = vld [vmem:[#allocation10 + $0x3d8] sm:$0xff] }
 0x26c   :  { %3903 = vmatprep.subr.bf16.mxu1 %v4330_v11  ;;  %v4378_v11 = vcombine.high %v356_v56, %v360_v57  ;;  %v400_v1 = vld [vmem:[#allocation10 + $0x3f8] sm:$0xff] }
 0x26e   :  { %3740 = vmatpush1.bf16.msra.mxu0 %v4327_v23  ;;  %v4375_v23 = vcombine.low %v355_v53, %v359_v55  ;;  %v403_v53 = vld [vmem:[#allocation10 + $0x410] sm:$0xff] }
 0x26f   :  { %3904 = vmatpush1.bf16.msra.mxu1 %v4329_v24  ;;  %3741 = vmatprep.subr.bf16.mxu0 %v4336_v25  ;;  %v4377_v24 = vcombine.low %v356_v56, %v360_v57  ;;  %v4384_v25 = vcombine.high %v363_v12, %v367_v13  ;;  %v407_v55 = vld [vmem:[#allocation10 + $0x430] sm:$0xff]  ;;  %v404_v56 = vld [vmem:[#allocation10 + $0x418] sm:$0xff] }
 0x270   :  { %3905 = vmatprep.subr.bf16.mxu1 %v4338_v3  ;;  %v4386_v3 = vcombine.high %v364_v14, %v368_v16  ;;  %v408_v57 = vld [vmem:[#allocation10 + $0x438] sm:$0xff] }
 0x272   :  { %3742 = vmatpush1.bf16.msra.mxu0 %v4335_v30  ;;  %v4383_v30 = vcombine.low %v363_v12, %v367_v13  ;;  %v411_v12 = vld [vmem:[#allocation10 + $0x450] sm:$0xff] }
 0x273   :  { %3906 = vmatpush1.bf16.msra.mxu1 %v4337_v31  ;;  %3743 = vmatprep.subr.bf16.mxu0 %v4344_v32  ;;  %v4385_v31 = vcombine.low %v364_v14, %v368_v16  ;;  %v4392_v32 = vcombine.high %v371_v26, %v375_v27  ;;  %v415_v13 = vld [vmem:[#allocation10 + $0x470] sm:$0xff]  ;;  %v4423_v14 = vcombine.low %v403_v53, %v407_v55  ;;  %v412_v16 = vld [vmem:[#allocation10 + $0x458] sm:$0xff] }
 0x274   :  { %3907 = vmatprep.subr.bf16.mxu1 %v4346_v33  ;;  %v4394_v33 = vcombine.high %v372_v28, %v376_v29 }
 0x276   :  { %3744 = vmatpush1.bf16.msra.mxu0 %v4343_v38  ;;  %v4391_v38 = vcombine.low %v371_v26, %v375_v27  ;;  %v423_v26 = vld [vmem:[#allocation10 + $0x4b0] sm:$0xff] }
 0x277   :  { %3908 = vmatpush1.bf16.msra.mxu1 %v4345_v40  ;;  %3745 = vmatprep.subr.bf16.mxu0 %v4352_v41  ;;  %v4393_v40 = vcombine.low %v372_v28, %v376_v29  ;;  %v4400_v41 = vcombine.high %v379_v34, %v383_v35  ;;  %v420_v28 = vld [vmem:[#allocation10 + $0x498] sm:$0xff] }
 0x278   :  { %3909 = vmatprep.subr.bf16.mxu1 %v4354_v42  ;;  %v4402_v42 = vcombine.high %v380_v36, %v384_v37  ;;  %v424_v29 = vld [vmem:[#allocation10 + $0x4b8] sm:$0xff] }
 0x27a   :  { %3746 = vmatpush1.bf16.msra.mxu0 %v4351_v58  ;;  %v4399_v58 = vcombine.low %v379_v34, %v383_v35  ;;  %v427_v34 = vld [vmem:[#allocation10 + $0x4d0] sm:$0xff] }
 0x27b   :  { %3910 = vmatpush1.bf16.msra.mxu1 %v4353_v59  ;;  %3747 = vmatprep.subr.bf16.mxu0 %v4360_v60  ;;  %v4401_v59 = vcombine.low %v380_v36, %v384_v37  ;;  %v4408_v60 = vcombine.high %v387_v43, %v391_v48  ;;  %v431_v35 = vld [vmem:[#allocation10 + $0x4f0] sm:$0xff]  ;;  %v428_v36 = vld [vmem:[#allocation10 + $0x4d8] sm:$0xff] }
 0x27c   :  { %3911 = vmatprep.subr.bf16.mxu1 %v4362_v61  ;;  %v4410_v61 = vcombine.high %v388_v50, %v392_v54  ;;  %v432_v37 = vld [vmem:[#allocation10 + $0x4f8] sm:$0xff] }
 0x27e   :  { %3748 = vmatpush1.bf16.msra.mxu0 %v4359_v2  ;;  %v4407_v2 = vcombine.low %v387_v43, %v391_v48  ;;  %v439_v43 = vld [vmem:[#allocation10 + $0x530] sm:$0xff]  ;;  %v436_v48 = vld [vmem:[#allocation10 + $0x518] sm:$0xff] }
 0x27f   :  { %3912 = vmatpush1.bf16.msra.mxu1 %v4361_v8  ;;  %3749 = vmatprep.subr.bf16.mxu0 %v4368_v51  ;;  %v4409_v8 = vcombine.low %v388_v50, %v392_v54  ;;  %v4416_v51 = vcombine.high %v395_v62, %v399_v63  ;;  %v440_v50 = vld [vmem:[#allocation10 + $0x538] sm:$0xff]  ;;  %v4449_v54 = vcombine.low %v428_v36, %v432_v37 }
 0x280   :  { %3913 = vmatprep.subr.bf16.mxu1 %v4370_v52  ;;  %v4418_v52 = vcombine.high %v396_v0, %v400_v1 }
 0x282   :  { %3750 = vmatpush1.bf16.msra.mxu0 %v4367_v45  ;;  %v4415_v45 = vcombine.low %v395_v62, %v399_v63  ;;  %v444_v62 = vld [vmem:[#allocation10 + $0x558] sm:$0xff] }
 0x283   :  { %3914 = vmatpush1.bf16.msra.mxu1 %v4369_v9  ;;  %3751 = vmatprep.subr.bf16.mxu0 %v4376_v10  ;;  %v4417_v9 = vcombine.low %v396_v0, %v400_v1  ;;  %v4424_v10 = vcombine.high %v403_v53, %v407_v55  ;;  %v448_v63 = vld [vmem:[#allocation10 + $0x578] sm:$0xff]  ;;  %v4457_v1 = vcombine.low %v436_v48, %v440_v50 }
 0x284   :  { %3915 = vmatprep.subr.bf16.mxu1 %v4378_v11  ;;  %v4426_v11 = vcombine.high %v404_v56, %v408_v57  ;;  %v452_v53 = vld [vmem:[#allocation10 + $0x598] sm:$0xff] }
 0x285   :  { %v456_v55 = vld [vmem:[#allocation10 + $0x5b8] sm:$0xff] }
 0x286   :  { %3752 = vmatpush1.bf16.msra.mxu0 %v4375_v23  ;;  %v416_v23 = vld [vmem:[#allocation10 + $0x478] sm:$0xff] }
 0x287   :  { %3916 = vmatpush1.bf16.msra.mxu1 %v4377_v24  ;;  %3753 = vmatprep.subr.bf16.mxu0 %v4384_v25  ;;  %v4425_v24 = vcombine.low %v404_v56, %v408_v57  ;;  %v4432_v25 = vcombine.high %v411_v12, %v415_v13  ;;  %v4434_v27 = vcombine.high %v412_v16, %v416_v23 }
 0x288   :  { %3917 = vmatprep.subr.bf16.mxu1 %v4386_v3  ;;  %v419_v3 = vld [vmem:[#allocation10 + $0x490] sm:$0xff]  ;;  %v4465_v57 = vcombine.low %v444_v62, %v448_v63 }
 0x28a   :  { %3754 = vmatpush1.bf16.msra.mxu0 %v4383_v30  ;;  %v4431_v30 = vcombine.low %v411_v12, %v415_v13  ;;  %v460_v12 = vld [vmem:[#allocation10 + $0x5d8] sm:$0xff] }
 0x28b   :  { %3918 = vmatpush1.bf16.msra.mxu1 %v4385_v31  ;;  %3755 = vmatprep.subr.bf16.mxu0 %v4392_v32  ;;  %v4433_v31 = vcombine.low %v412_v16, %v416_v23  ;;  %v4440_v32 = vcombine.high %v419_v3, %v423_v26  ;;  %v464_v13 = vld [vmem:[#allocation10 + $0x5f8] sm:$0xff]  ;;  %v4473_v16 = vcombine.low %v452_v53, %v456_v55 }
 0x28c   :  { %3919 = vmatprep.subr.bf16.mxu1 %v4394_v33  ;;  %v4442_v33 = vcombine.high %v420_v28, %v424_v29 }
 0x28e   :  { %3756 = vmatpush1.bf16.msra.mxu0 %v4391_v38  ;;  %v4439_v38 = vcombine.low %v419_v3, %v423_v26  ;;  %v471_v3 = vld [vmem:[#allocation10 + $0x630] sm:$0xff]  ;;  %v468_v26 = vld [vmem:[#allocation10 + $0x618] sm:$0xff] }
 0x28f   :  { %3920 = vmatpush1.bf16.msra.mxu1 %v4393_v40  ;;  %3757 = vmatprep.subr.bf16.mxu0 %v4400_v41  ;;  %v4448_v40 = vcombine.high %v427_v34, %v431_v35  ;;  %v4450_v41 = vcombine.high %v428_v36, %v432_v37 }
 0x290   :  { %3921 = vmatprep.subr.bf16.mxu1 %v4402_v42  ;;  %v435_v42 = vld [vmem:[#allocation10 + $0x510] sm:$0xff] }
 0x291   :  { %v4455_v0 = vcombine.low %v435_v42, %v439_v43 }
 0x292   :  { %3758 = vmatpush1.bf16.msra.mxu0 %v4399_v58  ;;  %v4456_v58 = vcombine.high %v435_v42, %v439_v43  ;;  %v484_v42 = vld [vmem:[#allocation10 + $0x698] sm:$0xff] }
 0x293   :  { %3922 = vmatpush1.bf16.msra.mxu1 %v4401_v59  ;;  %3759 = vmatprep.subr.bf16.mxu0 %v4408_v60  ;;  %v4458_v59 = vcombine.high %v436_v48, %v440_v50  ;;  %v443_v60 = vld [vmem:[#allocation10 + $0x550] sm:$0xff]  ;;  %v488_v43 = vld [vmem:[#allocation10 + $0x6b8] sm:$0xff] }
 0x294   :  { %3923 = vmatprep.subr.bf16.mxu1 %v4410_v61  ;;  %v447_v61 = vld [vmem:[#allocation10 + $0x570] sm:$0xff] }
 0x295   :  { %v4463_v56 = vcombine.low %v443_v60, %v447_v61 }
 0x296   :  { %3760 = vmatpush1.bf16.msra.mxu0 %v4407_v2  ;;  %v4464_v2 = vcombine.high %v443_v60, %v447_v61  ;;  %v492_v60 = vld [vmem:[#allocation10 + $0x6d8] sm:$0xff] }
 0x297   :  { %3924 = vmatpush1.bf16.msra.mxu1 %v4409_v8  ;;  %3761 = vmatprep.subr.bf16.mxu0 %v4416_v51  ;;  %v4466_v8 = vcombine.high %v444_v62, %v448_v63  ;;  %v451_v51 = vld [vmem:[#allocation10 + $0x590] sm:$0xff]  ;;  %v496_v61 = vld [vmem:[#allocation10 + $0x6f8] sm:$0xff]  ;;  %v4505_v63 = vcombine.low %v484_v42, %v488_v43 }
 0x298   :  { %3925 = vmatprep.subr.bf16.mxu1 %v4418_v52  ;;  %v455_v52 = vld [vmem:[#allocation10 + $0x5b0] sm:$0xff] }
 0x29a   :  { %3762 = vmatpush1.bf16.msra.mxu0 %v4415_v45  ;;  %v4472_v45 = vcombine.high %v451_v51, %v455_v52 }
 0x29b   :  { %3926 = vmatpush1.bf16.msra.mxu1 %v4417_v9  ;;  %3772 = vmatprep.subr.bf16.mxu0 %v4424_v10  ;;  %v4474_v9 = vcombine.high %v452_v53, %v456_v55  ;;  %v459_v10 = vld [vmem:[#allocation10 + $0x5d0] sm:$0xff]  ;;  %v4513_v55 = vcombine.low %v492_v60, %v496_v61 }
 0x29c   :  { %3936 = vmatprep.subr.bf16.mxu1 %v4426_v11  ;;  %v463_v11 = vld [vmem:[#allocation10 + $0x5f0] sm:$0xff] }
 0x29d   :  { %3764 = vmatmul.mubr.bf16.vlgmr.msra.gmra.mrb[4].mxu0 %v5175_v47  ;;  %v4480_v23 = vcombine.high %v459_v10, %v463_v11 }
 0x29e   :  { %3928 = vmatmul.mubr.bf16.vlgmr.msra.gmra.mrb[4].mxu1 %v5175_v47  ;;  %3773 = vmatpush1.bf16.msra.mxu0 %v4423_v14  ;;  %v4441_v47 = vcombine.low %v420_v28, %v424_v29  ;;  %v4471_v14 = vcombine.low %v451_v51, %v455_v52  ;;  %v4479_v28 = vcombine.low %v459_v10, %v463_v11  ;;  %v500_v51 = vld [vmem:[#allocation10 + $0x718] sm:$0xff] }
 0x29f   :  { %3804 = vmatprep.mubr.bf16.mxu0 %v5181_v49  ;;  %3937 = vmatpush1.bf16.msra.mxu1 %v4425_v24  ;;  %v4482_v24 = vcombine.high %v460_v12, %v464_v13  ;;  %v4481_v29 = vcombine.low %v460_v12, %v464_v13  ;;  %v504_v52 = vld [vmem:[#allocation10 + $0x738] sm:$0xff] }
 0x2a0   :  { %3968 = vmatprep.mubr.bf16.mxu1 %v5181_v49  ;;  %3774 = vmatprep.subr.bf16.mxu0 %v4432_v25  ;;  %v4447_v49 = vcombine.low %v427_v34, %v431_v35  ;;  %v467_v25 = vld [vmem:[#allocation10 + $0x610] sm:$0xff]  ;;  %v476_v34 = vld [vmem:[#allocation10 + $0x658] sm:$0xff]  ;;  %v4521_v13 = vcombine.low %v500_v51, %v504_v52 }
 0x2a1   :  { %3938 = vmatprep.subr.bf16.mxu1 %v4434_v27  ;;  %v472_v27 = vld [vmem:[#allocation10 + $0x638] sm:$0xff]  ;;  %v4487_v36 = vcombine.low %v467_v25, %v471_v3 }
 0x2a2   :  { %3775 = vmatpush1.bf16.msra.mxu0 %v4431_v30  ;;  %v4488_v30 = vcombine.high %v467_v25, %v471_v3  ;;  %v480_v35 = vld [vmem:[#allocation10 + $0x678] sm:$0xff]  ;;  %v4489_v37 = vcombine.low %v468_v26, %v472_v27 }
 0x2a3   :  { %3939 = vmatpush1.bf16.msra.mxu1 %v4433_v31  ;;  %3776 = vmatprep.subr.bf16.mxu0 %v4440_v32  ;;  %v4490_v31 = vcombine.high %v468_v26, %v472_v27  ;;  %v475_v32 = vld [vmem:[#allocation10 + $0x650] sm:$0xff]  ;;  %v4497_v50 = vcombine.low %v476_v34, %v480_v35  ;;  %v508_v10 = vld [vmem:[#allocation10 + $0x758] sm:$0xff] }
 0x2a4   :  { %3940 = vmatprep.subr.bf16.mxu1 %v4442_v33  ;;  %v479_v33 = vld [vmem:[#allocation10 + $0x670] sm:$0xff]  ;;  %v512_v11 = vld [vmem:[#allocation10 + $0x778] sm:$0xff] }
 0x2a5   :  { %v4495_v48 = vcombine.low %v475_v32, %v479_v33  ;;  %v516_v25 = vld [vmem:[#allocation10 + $0x798] sm:$0xff]  ;;  %v4529_v27 = vcombine.low %v508_v10, %v512_v11 }
 0x2a6   :  { %3777 = vmatpush1.bf16.msra.mxu0 %v4439_v38  ;;  %v4496_v38 = vcombine.high %v475_v32, %v479_v33  ;;  %v520_v3 = vld [vmem:[#allocation10 + $0x7b8] sm:$0xff] }
 0x2a7   :  { %3941 = vmatpush1.bf16.msra.mxu1 %v4441_v47  ;;  %3778 = vmatprep.subr.bf16.mxu0 %v4448_v40  ;;  %v4498_v47 = vcombine.high %v476_v34, %v480_v35  ;;  %v483_v40 = vld [vmem:[#allocation10 + $0x690] sm:$0xff]  ;;  %v524_v32 = vld [vmem:[#allocation10 + $0x7d8] sm:$0xff]  ;;  %v4537_v35 = vcombine.low %v516_v25, %v520_v3 }
 0x2a8   :  { %3942 = vmatprep.subr.bf16.mxu1 %v4450_v41  ;;  %v487_v41 = vld [vmem:[#allocation10 + $0x6b0] sm:$0xff]  ;;  %v528_v33 = vld [vmem:[#allocation10 + $0x7f8] sm:$0xff] }
 0x2a9   :  { %v4503_v62 = vcombine.low %v483_v40, %v487_v41 }
 0x2aa   :  { %3779 = vmatpush1.bf16.msra.mxu0 %v4447_v49  ;;  %v4504_v49 = vcombine.high %v483_v40, %v487_v41  ;;  %v532_v40 = vld [vmem:[#allocation10 + $0x818] sm:$0xff] }
 0x2ab   :  { %3943 = vmatpush1.bf16.msra.mxu1 %v4449_v54  ;;  %3780 = vmatprep.subr.bf16.mxu0 %v4456_v58  ;;  %v4506_v54 = vcombine.high %v484_v42, %v488_v43  ;;  %v491_v58 = vld [vmem:[#allocation10 + $0x6d0] sm:$0xff]  ;;  %v536_v41 = vld [vmem:[#allocation10 + $0x838] sm:$0xff]  ;;  %v4545_v43 = vcombine.low %v524_v32, %v528_v33 }
 0x2ac   :  { %3944 = vmatprep.subr.bf16.mxu1 %v4458_v59  ;;  %v495_v59 = vld [vmem:[#allocation10 + $0x6f0] sm:$0xff] }
 0x2ad   :  { %v4511_v53 = vcombine.low %v491_v58, %v495_v59 }
 0x2ae   :  { %3781 = vmatpush1.bf16.msra.mxu0 %v4455_v0  ;;  %v4512_v0 = vcombine.high %v491_v58, %v495_v59  ;;  %v540_v59 = vld [vmem:[#allocation10 + $0x858] sm:$0xff] }
 0x2af   :  { %3945 = vmatpush1.bf16.msra.mxu1 %v4457_v1  ;;  %3782 = vmatprep.subr.bf16.mxu0 %v4464_v2  ;;  %v4514_v1 = vcombine.high %v492_v60, %v496_v61  ;;  %v499_v2 = vld [vmem:[#allocation10 + $0x710] sm:$0xff]  ;;  %v544_v60 = vld [vmem:[#allocation10 + $0x878] sm:$0xff]  ;;  %v4553_v61 = vcombine.low %v532_v40, %v536_v41 }
 0x2b0   :  { %3946 = vmatprep.subr.bf16.mxu1 %v4466_v8  ;;  %v503_v8 = vld [vmem:[#allocation10 + $0x730] sm:$0xff] }
 0x2b1   :  { %v4519_v12 = vcombine.low %v499_v2, %v503_v8 }
 0x2b2   :  { %3783 = vmatpush1.bf16.msra.mxu0 %v4463_v56  ;;  %v4520_v56 = vcombine.high %v499_v2, %v503_v8  ;;  %v548_v2 = vld [vmem:[#allocation10 + $0x898] sm:$0xff] }
 0x2b3   :  { %3947 = vmatpush1.bf16.msra.mxu1 %v4465_v57  ;;  %3784 = vmatprep.subr.bf16.mxu0 %v4472_v45  ;;  %v4522_v57 = vcombine.high %v500_v51, %v504_v52  ;;  %v507_v45 = vld [vmem:[#allocation10 + $0x750] sm:$0xff]  ;;  %v552_v8 = vld [vmem:[#allocation10 + $0x8b8] sm:$0xff]  ;;  %v4561_v52 = vcombine.low %v540_v59, %v544_v60 }
 0x2b4   :  { %3948 = vmatprep.subr.bf16.mxu1 %v4474_v9  ;;  %v511_v9 = vld [vmem:[#allocation10 + $0x770] sm:$0xff] }
 0x2b5   :  { %v4527_v26 = vcombine.low %v507_v45, %v511_v9 }
 0x2b6   :  { %3785 = vmatpush1.bf16.msra.mxu0 %v4471_v14  ;;  %v4528_v14 = vcombine.high %v507_v45, %v511_v9  ;;  %v556_v45 = vld [vmem:[#allocation10 + $0x8d8] sm:$0xff] }
 0x2b7   :  { %3949 = vmatpush1.bf16.msra.mxu1 %v4473_v16  ;;  %3786 = vmatprep.subr.bf16.mxu0 %v4480_v23  ;;  %v4530_v16 = vcombine.high %v508_v10, %v512_v11  ;;  %v515_v23 = vld [vmem:[#allocation10 + $0x790] sm:$0xff]  ;;  %v560_v9 = vld [vmem:[#allocation10 + $0x8f8] sm:$0xff] }
 0x2b8   :  { %3950 = vmatprep.subr.bf16.mxu1 %v4482_v24  ;;  %v519_v24 = vld [vmem:[#allocation10 + $0x7b0] sm:$0xff] }
 0x2b9   :  { %v4535_v34 = vcombine.low %v515_v23, %v519_v24 }
 0x2ba   :  { %3787 = vmatpush1.bf16.msra.mxu0 %v4479_v28  ;;  %v4536_v28 = vcombine.high %v515_v23, %v519_v24  ;;  %v568_v23 = vld [vmem:[#allocation10 + $0x938] sm:$0xff]  ;;  %v4577_v24 = vcombine.low %v556_v45, %v560_v9 }
 0x2bb   :  { %3951 = vmatpush1.bf16.msra.mxu1 %v4481_v29  ;;  %3788 = vmatprep.subr.bf16.mxu0 %v4488_v30  ;;  %v4538_v29 = vcombine.high %v516_v25, %v520_v3  ;;  %v523_v30 = vld [vmem:[#allocation10 + $0x7d0] sm:$0xff] }
 0x2bc   :  { %3952 = vmatprep.subr.bf16.mxu1 %v4490_v31  ;;  %v527_v31 = vld [vmem:[#allocation10 + $0x7f0] sm:$0xff] }
 0x2bd   :  { %v4543_v42 = vcombine.low %v523_v30, %v527_v31 }
 0x2be   :  { %3789 = vmatpush1.bf16.msra.mxu0 %v4487_v36  ;;  %v4544_v36 = vcombine.high %v523_v30, %v527_v31 }
 0x2bf   :  { %3953 = vmatpush1.bf16.msra.mxu1 %v4489_v37  ;;  %3790 = vmatprep.subr.bf16.mxu0 %v4496_v38  ;;  %v4546_v37 = vcombine.high %v524_v32, %v528_v33  ;;  %v531_v38 = vld [vmem:[#allocation10 + $0x810] sm:$0xff] }
 0x2c0   :  { %3954 = vmatprep.subr.bf16.mxu1 %v4498_v47  ;;  %v535_v47 = vld [vmem:[#allocation10 + $0x830] sm:$0xff] }
 0x2c1   :  { %v4551_v58 = vcombine.low %v531_v38, %v535_v47 }
 0x2c2   :  { %3791 = vmatpush1.bf16.msra.mxu0 %v4495_v48  ;;  %v4552_v48 = vcombine.high %v531_v38, %v535_v47 }
 0x2c3   :  { %3955 = vmatpush1.bf16.msra.mxu1 %v4497_v50  ;;  %3792 = vmatprep.subr.bf16.mxu0 %v4504_v49  ;;  %v4554_v50 = vcombine.high %v532_v40, %v536_v41  ;;  %v539_v49 = vld [vmem:[#allocation10 + $0x850] sm:$0xff] }
 0x2c4   :  { %3956 = vmatprep.subr.bf16.mxu1 %v4506_v54  ;;  %v543_v54 = vld [vmem:[#allocation10 + $0x870] sm:$0xff] }
 0x2c5   :  { %v4559_v51 = vcombine.low %v539_v49, %v543_v54 }
 0x2c6   :  { %3793 = vmatpush1.bf16.msra.mxu0 %v4503_v62  ;;  %v4560_v62 = vcombine.high %v539_v49, %v543_v54 }
 0x2c7   :  { %3957 = vmatpush1.bf16.msra.mxu1 %v4505_v63  ;;  %3794 = vmatprep.subr.bf16.mxu0 %v4512_v0  ;;  %v547_v63 = vld [vmem:[#allocation10 + $0x890] sm:$0xff] }
 0x2c8   :  { %3958 = vmatprep.subr.bf16.mxu1 %v4514_v1  ;;  %v551_v0 = vld [vmem:[#allocation10 + $0x8b0] sm:$0xff]  ;;  %v4562_v1 = vcombine.high %v540_v59, %v544_v60 }
 0x2c9   :  { %v4567_v10 = vcombine.low %v547_v63, %v551_v0  ;;  %v595_v60 = vld [vmem:[#allocation10 + $0xa10] sm:$0xff] }
 0x2ca   :  { %3795 = vmatpush1.bf16.msra.mxu0 %v4511_v53  ;;  %v4568_v53 = vcombine.high %v547_v63, %v551_v0  ;;  %v600_v63 = vld [vmem:[#allocation10 + $0xa38] sm:$0xff] }
 0x2cb   :  { %3959 = vmatpush1.bf16.msra.mxu1 %v4513_v55  ;;  %3796 = vmatprep.subr.bf16.mxu0 %v4520_v56  ;;  %v4570_v55 = vcombine.high %v548_v2, %v552_v8  ;;  %v555_v56 = vld [vmem:[#allocation10 + $0x8d0] sm:$0xff] }
 0x2cc   :  { %3960 = vmatprep.subr.bf16.mxu1 %v4522_v57  ;;  %v559_v57 = vld [vmem:[#allocation10 + $0x8f0] sm:$0xff] }
 0x2cd   :  { %v4576_v11 = vcombine.high %v555_v56, %v559_v57 }
 0x2ce   :  { %3797 = vmatpush1.bf16.msra.mxu0 %v4519_v12  ;;  %v4578_v12 = vcombine.high %v556_v45, %v560_v9 }
 0x2cf   :  { %3961 = vmatpush1.bf16.msra.mxu1 %v4521_v13  ;;  %3798 = vmatprep.subr.bf16.mxu0 %v4528_v14  ;;  %v563_v13 = vld [vmem:[#allocation10 + $0x910] sm:$0xff] }
 0x2d0   :  { %3962 = vmatprep.subr.bf16.mxu1 %v4530_v16  ;;  %v567_v14 = vld [vmem:[#allocation10 + $0x930] sm:$0xff]  ;;  %v564_v16 = vld [vmem:[#allocation10 + $0x918] sm:$0xff] }
 0x2d1   :  { %v4584_v25 = vcombine.high %v563_v13, %v567_v14  ;;  %v4586_v3 = vcombine.high %v564_v16, %v568_v23  ;;  %v4583_v30 = vcombine.low %v563_v13, %v567_v14  ;;  %v4585_v31 = vcombine.low %v564_v16, %v568_v23 }
 0x2d2   :  { %3799 = vmatpush1.bf16.msra.mxu0 %v4527_v26  ;;  %v571_v26 = vld [vmem:[#allocation10 + $0x950] sm:$0xff] }
 0x2d3   :  { %3963 = vmatpush1.bf16.msra.mxu1 %v4529_v27  ;;  %3800 = vmatprep.subr.bf16.mxu0 %v4536_v28  ;;  %v575_v27 = vld [vmem:[#allocation10 + $0x970] sm:$0xff]  ;;  %v572_v28 = vld [vmem:[#allocation10 + $0x958] sm:$0xff] }
 0x2d4   :  { %3964 = vmatprep.subr.bf16.mxu1 %v4538_v29  ;;  %v576_v29 = vld [vmem:[#allocation10 + $0x978] sm:$0xff]  ;;  %v4592_v32 = vcombine.high %v571_v26, %v575_v27  ;;  %v4591_v38 = vcombine.low %v571_v26, %v575_v27 }
 0x2d5   :  { %v4594_v33 = vcombine.high %v572_v28, %v576_v29  ;;  %v4593_v47 = vcombine.low %v572_v28, %v576_v29 }
 0x2d6   :  { %3801 = vmatpush1.bf16.msra.mxu0 %v4535_v34  ;;  %v579_v34 = vld [vmem:[#allocation10 + $0x990] sm:$0xff] }
 0x2d7   :  { %3965 = vmatpush1.bf16.msra.mxu1 %v4537_v35  ;;  %3802 = vmatprep.subr.bf16.mxu0 %v4544_v36  ;;  %v583_v35 = vld [vmem:[#allocation10 + $0x9b0] sm:$0xff]  ;;  %v580_v36 = vld [vmem:[#allocation10 + $0x998] sm:$0xff] }
 0x2d8   :  { %3966 = vmatprep.subr.bf16.mxu1 %v4546_v37  ;;  %v584_v37 = vld [vmem:[#allocation10 + $0x9b8] sm:$0xff]  ;;  %v4600_v40 = vcombine.high %v579_v34, %v583_v35  ;;  %v4599_v49 = vcombine.low %v579_v34, %v583_v35 }
 0x2d9   :  { %v4602_v41 = vcombine.high %v580_v36, %v584_v37  ;;  %v4601_v54 = vcombine.low %v580_v36, %v584_v37 }
 0x2da   :  { %3803 = vmatpush1.bf16.msra.mxu0 %v4543_v42  ;;  %v587_v42 = vld [vmem:[#allocation10 + $0x9d0] sm:$0xff] }
 0x2db   :  { %3967 = vmatpush1.bf16.msra.mxu1 %v4545_v43  ;;  %3813 = vmatprep.subr.bf16.mxu0 %v4552_v48  ;;  %v591_v43 = vld [vmem:[#allocation10 + $0x9f0] sm:$0xff]  ;;  %v588_v48 = vld [vmem:[#allocation10 + $0x9d8] sm:$0xff] }
 0x2dc   :  { %3977 = vmatprep.subr.bf16.mxu1 %v4554_v50  ;;  %v592_v50 = vld [vmem:[#allocation10 + $0x9f8] sm:$0xff]  ;;  %v4607_v0 = vcombine.low %v587_v42, %v591_v43 }
 0x2dd   :  { %3805 = vmatmul.mubr.bf16.vlgmr.msra.gmra.mrb[4].mxu0 %v5195_v20  ;;  %v4610_v59 = vcombine.high %v588_v48, %v592_v50 }
 0x2de   :  { %3969 = vmatmul.mubr.bf16.vlgmr.msra.gmra.mrb[4].mxu1 %v5195_v20  ;;  %3814 = vmatpush1.bf16.msra.mxu0 %v4551_v58  ;;  %v4569_v20 = vcombine.low %v548_v2, %v552_v8  ;;  %v4608_v58 = vcombine.high %v587_v42, %v591_v43 }
 0x2df   :  { %3845 = vmatprep.mubr.bf16.mxu0 %v5173_v46  ;;  %3978 = vmatpush1.bf16.msra.mxu1 %v4553_v61  ;;  %v599_v61 = vld [vmem:[#allocation10 + $0xa30] sm:$0xff] }
 0x2e0   :  { %4009 = vmatprep.mubr.bf16.mxu1 %v5173_v46  ;;  %3815 = vmatprep.subr.bf16.mxu0 %v4560_v62  ;;  %v4575_v46 = vcombine.low %v555_v56, %v559_v57  ;;  %v596_v62 = vld [vmem:[#allocation10 + $0xa18] sm:$0xff]  ;;  %v4616_v2 = vcombine.high %v595_v60, %v599_v61  ;;  %v4615_v56 = vcombine.low %v595_v60, %v599_v61 }
 0x2e1   :  { %3979 = vmatprep.subr.bf16.mxu1 %v4562_v1  ;;  %v4609_v1 = vcombine.low %v588_v48, %v592_v50  ;;  %v4618_v8 = vcombine.high %v596_v62, %v600_v63  ;;  %v4617_v57 = vcombine.low %v596_v62, %v600_v63 }
 0x2e2   :  { %3816 = vmatpush1.bf16.msra.mxu0 %v4559_v51  ;;  %v603_v51 = vld [vmem:[#allocation10 + $0xa50] sm:$0xff] }
 0x2e3   :  { %3980 = vmatpush1.bf16.msra.mxu1 %v4561_v52  ;;  %3817 = vmatprep.subr.bf16.mxu0 %v4568_v53  ;;  %v607_v52 = vld [vmem:[#allocation10 + $0xa70] sm:$0xff]  ;;  %v604_v53 = vld [vmem:[#allocation10 + $0xa58] sm:$0xff] }
 0x2e4   :  { %3981 = vmatprep.subr.bf16.mxu1 %v4570_v55  ;;  %v608_v55 = vld [vmem:[#allocation10 + $0xa78] sm:$0xff]  ;;  %v4624_v45 = vcombine.high %v603_v51, %v607_v52  ;;  %v4623_v13 = vcombine.low %v603_v51, %v607_v52 }
 0x2e5   :  { %v4626_v9 = vcombine.high %v604_v53, %v608_v55  ;;  %v4625_v14 = vcombine.low %v604_v53, %v608_v55 }
 0x2e6   :  { %3818 = vmatpush1.bf16.msra.mxu0 %v4567_v10  ;;  %v611_v10 = vld [vmem:[#allocation10 + $0xa90] sm:$0xff] }
 0x2e7   :  { %3982 = vmatpush1.bf16.msra.mxu1 %v4569_v20  ;;  %3819 = vmatprep.subr.bf16.mxu0 %v4576_v11  ;;  %v615_v20 = vld [vmem:[#allocation10 + $0xab0] sm:$0xff]  ;;  %v612_v11 = vld [vmem:[#allocation10 + $0xa98] sm:$0xff] }
 0x2e8   :  { %3983 = vmatprep.subr.bf16.mxu1 %v4578_v12  ;;  %v616_v12 = vld [vmem:[#allocation10 + $0xab8] sm:$0xff]  ;;  %v4632_v16 = vcombine.high %v611_v10, %v615_v20  ;;  %v4631_v26 = vcombine.low %v611_v10, %v615_v20 }
 0x2e9   :  { %v4634_v23 = vcombine.high %v612_v11, %v616_v12  ;;  %v4633_v27 = vcombine.low %v612_v11, %v616_v12 }
 0x2ea   :  { %3820 = vmatpush1.bf16.msra.mxu0 %v4575_v46  ;;  %v619_v46 = vld [vmem:[#allocation10 + $0xad0] sm:$0xff] }
 0x2eb   :  { %3984 = vmatpush1.bf16.msra.mxu1 %v4577_v24  ;;  %3821 = vmatprep.subr.bf16.mxu0 %v4584_v25  ;;  %v623_v24 = vld [vmem:[#allocation10 + $0xaf0] sm:$0xff]  ;;  %v620_v25 = vld [vmem:[#allocation10 + $0xad8] sm:$0xff] }
 0x2ec   :  { %3985 = vmatprep.subr.bf16.mxu1 %v4586_v3  ;;  %v624_v3 = vld [vmem:[#allocation10 + $0xaf8] sm:$0xff]  ;;  %v4640_v28 = vcombine.high %v619_v46, %v623_v24  ;;  %v4639_v34 = vcombine.low %v619_v46, %v623_v24 }
 0x2ed   :  { %v4642_v29 = vcombine.high %v620_v25, %v624_v3  ;;  %v4641_v35 = vcombine.low %v620_v25, %v624_v3  ;;  %v672_v46 = vld [vmem:[#allocation10 + $0xc78] sm:$0xff]  ;;  %v675_v3 = vld [vmem:[#allocation10 + $0xc90] sm:$0xff] }
 0x2ee   :  { %3822 = vmatpush1.bf16.msra.mxu0 %v4583_v30  ;;  %v627_v30 = vld [vmem:[#allocation10 + $0xb10] sm:$0xff] }
 0x2ef   :  { %3986 = vmatpush1.bf16.msra.mxu1 %v4585_v31  ;;  %3823 = vmatprep.subr.bf16.mxu0 %v4592_v32  ;;  %v631_v31 = vld [vmem:[#allocation10 + $0xb30] sm:$0xff]  ;;  %v628_v32 = vld [vmem:[#allocation10 + $0xb18] sm:$0xff] }
 0x2f0   :  { %3987 = vmatprep.subr.bf16.mxu1 %v4594_v33  ;;  %v632_v33 = vld [vmem:[#allocation10 + $0xb38] sm:$0xff]  ;;  %v4648_v36 = vcombine.high %v627_v30, %v631_v31  ;;  %v4647_v42 = vcombine.low %v627_v30, %v631_v31 }
 0x2f1   :  { %v4650_v37 = vcombine.high %v628_v32, %v632_v33  ;;  %v4649_v43 = vcombine.low %v628_v32, %v632_v33 }
 0x2f2   :  { %3824 = vmatpush1.bf16.msra.mxu0 %v4591_v38  ;;  %v635_v38 = vld [vmem:[#allocation10 + $0xb50] sm:$0xff] }
 0x2f3   :  { %3988 = vmatpush1.bf16.msra.mxu1 %v4593_v47  ;;  %3825 = vmatprep.subr.bf16.mxu0 %v4600_v40  ;;  %v639_v47 = vld [vmem:[#allocation10 + $0xb70] sm:$0xff]  ;;  %v636_v40 = vld [vmem:[#allocation10 + $0xb58] sm:$0xff] }
 0x2f4   :  { %3989 = vmatprep.subr.bf16.mxu1 %v4602_v41  ;;  %v640_v41 = vld [vmem:[#allocation10 + $0xb78] sm:$0xff]  ;;  %v4656_v48 = vcombine.high %v635_v38, %v639_v47  ;;  %v4655_v60 = vcombine.low %v635_v38, %v639_v47 }
 0x2f5   :  { %v4658_v50 = vcombine.high %v636_v40, %v640_v41  ;;  %v4657_v61 = vcombine.low %v636_v40, %v640_v41  ;;  %v691_v41 = vld [vmem:[#allocation10 + $0xd10] sm:$0xff] }
 0x2f6   :  { %3826 = vmatpush1.bf16.msra.mxu0 %v4599_v49  ;;  %v643_v49 = vld [vmem:[#allocation10 + $0xb90] sm:$0xff] }
 0x2f7   :  { %3990 = vmatpush1.bf16.msra.mxu1 %v4601_v54  ;;  %3827 = vmatprep.subr.bf16.mxu0 %v4608_v58  ;;  %v647_v54 = vld [vmem:[#allocation10 + $0xbb0] sm:$0xff]  ;;  %v644_v58 = vld [vmem:[#allocation10 + $0xb98] sm:$0xff] }
 0x2f8   :  { %3991 = vmatprep.subr.bf16.mxu1 %v4610_v59  ;;  %v648_v59 = vld [vmem:[#allocation10 + $0xbb8] sm:$0xff]  ;;  %v4664_v62 = vcombine.high %v643_v49, %v647_v54  ;;  %v4663_v51 = vcombine.low %v643_v49, %v647_v54 }
 0x2f9   :  { %v4666_v63 = vcombine.high %v644_v58, %v648_v59  ;;  %v4665_v52 = vcombine.low %v644_v58, %v648_v59  ;;  %v699_v59 = vld [vmem:[#allocation10 + $0xd50] sm:$0xff] }
 0x2fa   :  { %3828 = vmatpush1.bf16.msra.mxu0 %v4607_v0  ;;  %v651_v0 = vld [vmem:[#allocation10 + $0xbd0] sm:$0xff] }
 0x2fb   :  { %3992 = vmatpush1.bf16.msra.mxu1 %v4609_v1  ;;  %3829 = vmatprep.subr.bf16.mxu0 %v4616_v2  ;;  %v655_v1 = vld [vmem:[#allocation10 + $0xbf0] sm:$0xff]  ;;  %v652_v2 = vld [vmem:[#allocation10 + $0xbd8] sm:$0xff] }
 0x2fc   :  { %3993 = vmatprep.subr.bf16.mxu1 %v4618_v8  ;;  %v656_v8 = vld [vmem:[#allocation10 + $0xbf8] sm:$0xff]  ;;  %v4672_v53 = vcombine.high %v651_v0, %v655_v1  ;;  %v4671_v10 = vcombine.low %v651_v0, %v655_v1  ;;  %v5229_v0 = vpop.permute.xlu1 %4073 }
 0x2fd   :  { %v4674_v55 = vcombine.high %v652_v2, %v656_v8  ;;  %v4673_v20 = vcombine.low %v652_v2, %v656_v8 }
 0x2fe   :  { %3830 = vmatpush1.bf16.msra.mxu0 %v4615_v56  ;;  %v659_v56 = vld [vmem:[#allocation10 + $0xc10] sm:$0xff] }
 0x2ff   :  { %3994 = vmatpush1.bf16.msra.mxu1 %v4617_v57  ;;  %3831 = vmatprep.subr.bf16.mxu0 %v4624_v45  ;;  %v663_v57 = vld [vmem:[#allocation10 + $0xc30] sm:$0xff]  ;;  %v660_v45 = vld [vmem:[#allocation10 + $0xc18] sm:$0xff] }
 0x300   :  { %3995 = vmatprep.subr.bf16.mxu1 %v4626_v9  ;;  %v664_v9 = vld [vmem:[#allocation10 + $0xc38] sm:$0xff]  ;;  %v4680_v11 = vcombine.high %v659_v56, %v663_v57 }
 0x301   :  { %v4682_v12 = vcombine.high %v660_v45, %v664_v9  ;;  %v4681_v24 = vcombine.low %v660_v45, %v664_v9  ;;  %v712_v45 = vld [vmem:[#allocation10 + $0xdb8] sm:$0xff]  ;;  %v5233_v9 = vpop.permute.xlu1 %4129 }
 0x302   :  { %3832 = vmatpush1.bf16.msra.mxu0 %v4623_v13  ;;  %v667_v13 = vld [vmem:[#allocation10 + $0xc50] sm:$0xff] }
 0x303   :  { %3996 = vmatpush1.bf16.msra.mxu1 %v4625_v14  ;;  %3833 = vmatprep.subr.bf16.mxu0 %v4632_v16  ;;  %v671_v14 = vld [vmem:[#allocation10 + $0xc70] sm:$0xff]  ;;  %v4679_v16 = vcombine.low %v659_v56, %v663_v57  ;;  %v708_v57 = vld [vmem:[#allocation10 + $0xd98] sm:$0xff] }
 0x304   :  { %3997 = vmatprep.subr.bf16.mxu1 %v4634_v23  ;;  %v668_v23 = vld [vmem:[#allocation10 + $0xc58] sm:$0xff]  ;;  %v4688_v25 = vcombine.high %v667_v13, %v671_v14  ;;  %v4687_v30 = vcombine.low %v667_v13, %v671_v14  ;;  %v4120_v13 = vmul.f32 %v5229_v0, %v5133_v15  ;;  %v4122_v14 = vmul.f32 %v5229_v0, %v5139_v18 }
 0x305   :  { %v4689_v31 = vcombine.low %v668_v23, %v672_v46  ;;  %v716_v15 = vld [vmem:[#allocation10 + $0xdd8] sm:$0xff] }
 0x306   :  { %3834 = vmatpush1.bf16.msra.mxu0 %v4631_v26  ;;  %v679_v26 = vld [vmem:[#allocation10 + $0xcb0] sm:$0xff] }
 0x307   :  { %3998 = vmatpush1.bf16.msra.mxu1 %v4633_v27  ;;  %3835 = vmatprep.subr.bf16.mxu0 %v4640_v28  ;;  %v4690_v27 = vcombine.high %v668_v23, %v672_v46  ;;  %v676_v28 = vld [vmem:[#allocation10 + $0xc98] sm:$0xff]  ;;  %v4696_v32 = vcombine.high %v675_v3, %v679_v26  ;;  %v4695_v38 = vcombine.low %v675_v3, %v679_v26  ;;  %v715_v46 = vld [vmem:[#allocation10 + $0xdd0] sm:$0xff] }
 0x308   :  { %3999 = vmatprep.subr.bf16.mxu1 %v4642_v29  ;;  %v680_v29 = vld [vmem:[#allocation10 + $0xcb8] sm:$0xff]  ;;  %v4730_v23 = vcombine.high %v708_v57, %v712_v45 }
 0x309   :  { %v4698_v33 = vcombine.high %v676_v28, %v680_v29 }
 0x30a   :  { %3836 = vmatpush1.bf16.msra.mxu0 %v4639_v34  ;;  %v683_v34 = vld [vmem:[#allocation10 + $0xcd0] sm:$0xff] }
 0x30b   :  { %4000 = vmatpush1.bf16.msra.mxu1 %v4641_v35  ;;  %3837 = vmatprep.subr.bf16.mxu0 %v4648_v36  ;;  %v687_v35 = vld [vmem:[#allocation10 + $0xcf0] sm:$0xff]  ;;  %v684_v36 = vld [vmem:[#allocation10 + $0xcd8] sm:$0xff] }
 0x30c   :  { %4001 = vmatprep.subr.bf16.mxu1 %v4650_v37  ;;  %v688_v37 = vld [vmem:[#allocation10 + $0xcf8] sm:$0xff]  ;;  %v4704_v47 = vcombine.high %v683_v34, %v687_v35 }
 0x30d   :  { %v4706_v40 = vcombine.high %v684_v36, %v688_v37  ;;  %v4705_v49 = vcombine.low %v684_v36, %v688_v37 }
 0x30e   :  { %3838 = vmatpush1.bf16.msra.mxu0 %v4647_v42  ;;  %v695_v42 = vld [vmem:[#allocation10 + $0xd30] sm:$0xff] }
 0x30f   :  { %4002 = vmatpush1.bf16.msra.mxu1 %v4649_v43  ;;  %3839 = vmatprep.subr.bf16.mxu0 %v4656_v48  ;;  %v692_v43 = vld [vmem:[#allocation10 + $0xd18] sm:$0xff]  ;;  %v4712_v54 = vcombine.high %v691_v41, %v695_v42  ;;  %v4711_v1 = vcombine.low %v691_v41, %v695_v42  ;;  %v5247_v41 = vpop.permute.xlu1 %4201 }
 0x310   :  { %4003 = vmatprep.subr.bf16.mxu1 %v4658_v50  ;;  %v696_v48 = vld [vmem:[#allocation10 + $0xd38] sm:$0xff] }
 0x311   :  { %v4068_v50 = vld [vmem:[#allocation4] sm:$0xff]  ;;  %v4714_v58 = vcombine.high %v692_v43, %v696_v48  ;;  %v4713_v2 = vcombine.low %v692_v43, %v696_v48  ;;  %v723_v43 = vld [vmem:[#allocation10 + $0xe10] sm:$0xff] }
 0x312   :  { %3840 = vmatpush1.bf16.msra.mxu0 %v4655_v60  ;;  %v703_v60 = vld [vmem:[#allocation10 + $0xd70] sm:$0xff] }
 0x313   :  { %4004 = vmatpush1.bf16.msra.mxu1 %v4657_v61  ;;  %3841 = vmatprep.subr.bf16.mxu0 %v4664_v62  ;;  %v4150_v61 = vcombine.high %v4068_v50, %v4068_v50  ;;  %v700_v62 = vld [vmem:[#allocation10 + $0xd58] sm:$0xff]  ;;  %v4720_v8 = vcombine.high %v699_v59, %v703_v60  ;;  %v727_v48 = vld [vmem:[#allocation10 + $0xe30] sm:$0xff] }
 0x314   :  { %4005 = vmatprep.subr.bf16.mxu1 %v4666_v63  ;;  %v704_v63 = vld [vmem:[#allocation10 + $0xd78] sm:$0xff] }
 0x315   :  { %v4164_v56 = vrot.slane %v4150_v61, %v5091_v5 }
 0x316   :  { %3842 = vmatpush1.bf16.msra.mxu0 %v4663_v51  ;;  %v4722_v51 = vcombine.high %v700_v62, %v704_v63 }
 0x317   :  { %4006 = vmatpush1.bf16.msra.mxu1 %v4665_v52  ;;  %3843 = vmatprep.subr.bf16.mxu0 %v4672_v53  ;;  %v707_v52 = vld [vmem:[#allocation10 + $0xd90] sm:$0xff] }
 0x318   :  { %4007 = vmatprep.subr.bf16.mxu1 %v4674_v55  ;;  %v711_v53 = vld [vmem:[#allocation10 + $0xdb0] sm:$0xff]  ;;  %v4157_v55 = vrot.slane %v4068_v50, %v5091_v5 }
 0x31a   :  { %3844 = vmatpush1.bf16.msra.mxu0 %v4671_v10  ;;  %v4719_v10 = vcombine.low %v699_v59, %v703_v60 }
 0x31b   :  { %4008 = vmatpush1.bf16.msra.mxu1 %v4673_v20  ;;  %3854 = vmatprep.subr.bf16.mxu0 %v4680_v11  ;;  %v4721_v20 = vcombine.low %v700_v62, %v704_v63  ;;  %v4728_v11 = vcombine.high %v707_v52, %v711_v53  ;;  %v4744_v63 = vcombine.high %v723_v43, %v727_v48 }
 0x31c   :  { %4018 = vmatprep.subr.bf16.mxu1 %v4682_v12 }
 0x31d   :  { %3846 = vmatmul.mubr.bf16.vlgmr.msra.gmra.mrb[4].mxu0 %v5169_v44 }
 0x31e   :  { %4010 = vmatmul.mubr.bf16.vlgmr.msra.gmra.mrb[4].mxu1 %v5169_v44  ;;  %3855 = vmatpush1.bf16.msra.mxu0 %v4679_v16  ;;  %v4697_v44 = vcombine.low %v676_v28, %v680_v29  ;;  %v4121_v16 = vmul.f32 %v5229_v0, %v5143_v19  ;;  %v4123_v28 = vmul.f32 %v5229_v0, %v5155_v21 }
 0x31f   :  { %3886 = vmatprep.mubr.bf16.mxu0 %v5204_v4  ;;  %4019 = vmatpush1.bf16.msra.mxu1 %v4681_v24  ;;  %v719_v24 = vld [vmem:[#allocation10 + $0xdf0] sm:$0xff]  ;;  %v4166_v29 = vcombine.high %v4164_v56, %v4164_v56 }
 0x320   :  { %4050 = vmatprep.mubr.bf16.mxu1 %v5204_v4  ;;  %3856 = vmatprep.subr.bf16.mxu0 %v4688_v25  ;;  %v4703_v4 = vcombine.low %v683_v34, %v687_v35  ;;  %v4729_v34 = vcombine.low %v708_v57, %v712_v45  ;;  %v4736_v21 = vcombine.high %v715_v46, %v719_v24 }
 0x321   :  { %4020 = vmatprep.subr.bf16.mxu1 %v4690_v27  ;;  %v4165_v27 = vcombine.high %v4157_v55, %v4157_v55  ;;  %v4735_v60 = vcombine.low %v715_v46, %v719_v24  ;;  %v743_v46 = vld [vmem:[#allocation10 + $0xeb0] sm:$0xff] }
 0x322   :  { %3857 = vmatpush1.bf16.msra.mxu0 %v4687_v30  ;;  %v720_v30 = vld [vmem:[#allocation10 + $0xdf8] sm:$0xff] }
 0x323   :  { %4021 = vmatpush1.bf16.msra.mxu1 %v4689_v31  ;;  %3858 = vmatprep.subr.bf16.mxu0 %v4696_v32  ;;  %v4738_v42 = vcombine.high %v716_v15, %v720_v30  ;;  %v4737_v61 = vcombine.low %v716_v15, %v720_v30 }
 0x324   :  { %4022 = vmatprep.subr.bf16.mxu1 %v4698_v33  ;;  %v4727_v33 = vcombine.low %v707_v52, %v711_v53 }
 0x326   :  { %3859 = vmatpush1.bf16.msra.mxu0 %v4695_v38 }
 0x327   :  { %4023 = vmatpush1.bf16.msra.mxu1 %v4697_v44  ;;  %3860 = vmatprep.subr.bf16.mxu0 %v4704_v47 }
 0x328   :  { %4024 = vmatprep.subr.bf16.mxu1 %v4706_v40 }
 0x32a   :  { %3861 = vmatpush1.bf16.msra.mxu0 %v4703_v4 }
 0x32b   :  { %4025 = vmatpush1.bf16.msra.mxu1 %v4705_v49  ;;  %3862 = vmatprep.subr.bf16.mxu0 %v4712_v54  ;;  %v724_v49 = vld [vmem:[#allocation10 + $0xe18] sm:$0xff] }
 0x32c   :  { %4026 = vmatprep.subr.bf16.mxu1 %v4714_v58  ;;  %v728_v54 = vld [vmem:[#allocation10 + $0xe38] sm:$0xff] }
 0x32e   :  { %3863 = vmatpush1.bf16.msra.mxu0 %v4711_v1 }
 0x32f   :  { %4027 = vmatpush1.bf16.msra.mxu1 %v4713_v2  ;;  %3864 = vmatprep.subr.bf16.mxu0 %v4720_v8  ;;  %v4746_v2 = vcombine.high %v724_v49, %v728_v54  ;;  %v731_v8 = vld [vmem:[#allocation10 + $0xe50] sm:$0xff] }
 0x330   :  { %v3560_v12 = vpop.f32.mrb[0].mxu0  ;;  %4028 = vmatprep.subr.bf16.mxu1 %v4722_v51  ;;  %v735_v51 = vld [vmem:[#allocation10 + $0xe70] sm:$0xff] }
 0x331   :  { %v4132_v25 = vmul.f32 %v5233_v9, %v3560_v12  ;;  %v3724_v3 = vpop.f32.mrb[0].mxu1  ;;  %v3562_v26 = vpop.f32.mrb[1].mxu0  ;;  %v4745_v12 = vcombine.low %v724_v49, %v728_v54  ;;  %v767_v49 = vld [vmem:[#allocation10 + $0xf70] sm:$0xff]  ;;  %v764_v54 = vld [vmem:[#allocation10 + $0xf58] sm:$0xff] }
 0x332   :  { %v4134_v18 = vmul.f32 %v5233_v9, %v3724_v3  ;;  %v4133_v31 = vmul.f32 %v5233_v9, %v3562_v26  ;;  %v3726_v19 = vpop.f32.mrb[1].mxu1  ;;  %v3564_v32 = vpop.f32.mrb[2].mxu0  ;;  %3865 = vmatpush1.bf16.msra.mxu0 %v4719_v10  ;;  %v4743_v10 = vcombine.low %v723_v43, %v727_v48  ;;  %v744_v3 = vld [vmem:[#allocation10 + $0xeb8] sm:$0xff] }
 0x333   :  { %v4140_v35 = vadd.f32 %v4132_v25, %v4120_v13  ;;  %v4135_v36 = vmul.f32 %v5233_v9, %v3726_v19  ;;  %v3728_v37 = vpop.f32.mrb[2].mxu1  ;;  %4029 = vmatpush1.bf16.msra.mxu1 %v4721_v20  ;;  %v3565_v38 = vpop.f32.mrb[3].mxu0  ;;  %3866 = vmatprep.subr.bf16.mxu0 %v4728_v11  ;;  %v4752_v13 = vcombine.high %v731_v8, %v735_v51  ;;  %v740_v25 = vld [vmem:[#allocation10 + $0xe98] sm:$0xff]  ;;  %v751_v19 = vld [vmem:[#allocation10 + $0xef0] sm:$0xff] }
 0x334   :  { %v4142_v44 = vadd.f32 %v4134_v18, %v4122_v14  ;;  %v4141_v47 = vadd.f32 %v4133_v31, %v4121_v16  ;;  %v3729_v40 = vpop.f32.mrb[3].mxu1  ;;  %4030 = vmatprep.subr.bf16.mxu1 %v4730_v23  ;;  %v739_v23 = vld [vmem:[#allocation10 + $0xe90] sm:$0xff]  ;;  %v4762_v18 = vcombine.high %v740_v25, %v744_v3  ;;  %v748_v32 = vld [vmem:[#allocation10 + $0xed8] sm:$0xff] }
 0x335   :  { %v4192_v4 = vsub.f32 %v4140_v35, %v4157_v55  ;;  %v4143_v50 = vadd.f32 %v4135_v36, %v4123_v28  ;;  %v732_v55 = vld [vmem:[#allocation10 + $0xe58] sm:$0xff]  ;;  %v4760_v15 = vcombine.high %v739_v23, %v743_v46  ;;  %v747_v31 = vld [vmem:[#allocation10 + $0xed0] sm:$0xff]  ;;  %v4759_v35 = vcombine.low %v739_v23, %v743_v46  ;;  %v4069_v23 = vld [vmem:[#allocation4 + $0x8] sm:$0xff] }
 0x336   :  { %v4194_v58 = vsub.f32 %v4142_v44, %v4164_v56  ;;  %v4193_v59 = vsub.f32 %v4141_v47, %v4165_v27  ;;  %3867 = vmatpush1.bf16.msra.mxu0 %v4727_v33  ;;  %v736_v56 = vld [vmem:[#allocation10 + $0xe78] sm:$0xff]  ;;  %v4751_v27 = vcombine.low %v731_v8, %v735_v51  ;;  %v4761_v36 = vcombine.low %v740_v25, %v744_v3  ;;  %v759_v44 = vld [vmem:[#allocation10 + $0xf30] sm:$0xff] }
 0x337   :  { %v4195_v62 = vsub.f32 %v4143_v50, %v4166_v29  ;;  %4031 = vmatpush1.bf16.msra.mxu1 %v4729_v34  ;;  %3868 = vmatprep.subr.bf16.mxu0 %v4736_v21  ;;  %v4204_v1 = vmul.f32 %v5247_v41, %v4192_v4  ;;  %v4754_v16 = vcombine.high %v732_v55, %v736_v56  ;;  %v752_v33 = vld [vmem:[#allocation10 + $0xef8] sm:$0xff]  ;;  %v755_v21 = vld [vmem:[#allocation10 + $0xf10] sm:$0xff] }
 0x338   :  { %4032 = vmatprep.subr.bf16.mxu1 %v4738_v42  ;;  %v4205_v52 = vmul.f32 %v5247_v41, %v4193_v59  ;;  %v4206_v53 = vmul.f32 %v5247_v41, %v4194_v58  ;;  %v4753_v29 = vcombine.low %v732_v55, %v736_v56  ;;  %v4768_v37 = vcombine.high %v747_v31, %v751_v19  ;;  %v756_v47 = vld [vmem:[#allocation10 + $0xf18] sm:$0xff]  ;;  %v763_v50 = vld [vmem:[#allocation10 + $0xf50] sm:$0xff] }
 0x339   :  { %v4207_v57 = vmul.f32 %v5247_v41, %v4195_v62  ;;  %v4212_v45 = vmul.f32 %v4204_v1, %v4192_v4  ;;  %v4770_v38 = vcombine.high %v748_v32, %v752_v33  ;;  %v760_v40 = vld [vmem:[#allocation10 + $0xf38] sm:$0xff]  ;;  %v4767_v42 = vcombine.low %v747_v31, %v751_v19  ;;  %v775_v1 = vld [vmem:[#allocation10 + $0xfb0] sm:$0xff] }
 0x33a   :  { %3869 = vmatpush1.bf16.msra.mxu0 %v4735_v60  ;;  %v4213_v20 = vmul.f32 %v4205_v52, %v4193_v59  ;;  %v4214_v11 = vmul.f32 %v4206_v53, %v4194_v58  ;;  %v4769_v43 = vcombine.low %v748_v32, %v752_v33  ;;  %v4776_v48 = vcombine.high %v755_v21, %v759_v44  ;;  %v768_v58 = vld [vmem:[#allocation10 + $0xf78] sm:$0xff]  ;;  %v779_v56 = vld [vmem:[#allocation10 + $0xfd0] sm:$0xff] }
 0x33b   :  { %4033 = vmatpush1.bf16.msra.mxu1 %v4737_v61  ;;  %3870 = vmatprep.subr.bf16.mxu0 %v4744_v63  ;;  %v4215_v14 = vmul.f32 %v4207_v57, %v4195_v62  ;;  %v4778_v4 = vcombine.high %v756_v47, %v760_v40  ;;  %v4775_v59 = vcombine.low %v755_v21, %v759_v44  ;;  %v771_v63 = vld [vmem:[#allocation10 + $0xf90] sm:$0xff]  ;;  %v776_v8 = vld [vmem:[#allocation10 + $0xfb8] sm:$0xff] }
 0x33c   :  { %4034 = vmatprep.subr.bf16.mxu1 %v4746_v2  ;;  %v4228_v24 = vcombine.low %v4212_v45, %v4213_v20  ;;  %v4777_v60 = vcombine.low %v756_v47, %v760_v40  ;;  %v4784_v61 = vcombine.high %v763_v50, %v767_v49  ;;  %v4786_v62 = vcombine.high %v764_v54, %v768_v58  ;;  %v772_v2 = vld [vmem:[#allocation10 + $0xf98] sm:$0xff]  ;;  %v783_v57 = vld [vmem:[#allocation10 + $0xff0] sm:$0xff] }
 0x33d   :  { %v4229_v26 = vcombine.low %v4214_v11, %v4215_v14  ;;  %v4783_v51 = vcombine.low %v763_v50, %v767_v49  ;;  %v4785_v52 = vcombine.low %v764_v54, %v768_v58  ;;  %v4792_v53 = vcombine.high %v771_v63, %v775_v1  ;;  %v780_v45 = vld [vmem:[#allocation10 + $0xfd8] sm:$0xff] }
 0x33e   :  { %3871 = vmatpush1.bf16.msra.mxu0 %v4743_v10  ;;  %v4236_v28 = vrot.slane %v4228_v24, %v5091_v5  ;;  %v4794_v55 = vcombine.high %v772_v2, %v776_v8  ;;  %v784_v10 = vld [vmem:[#allocation10 + $0xff8] sm:$0xff]  ;;  %v4791_v20 = vcombine.low %v771_v63, %v775_v1  ;;  %v4793_v11 = vcombine.low %v772_v2, %v776_v8 }
 0x33f   :  { %4035 = vmatpush1.bf16.msra.mxu1 %v4745_v12  ;;  %3872 = vmatprep.subr.bf16.mxu0 %v4752_v13  ;;  %v4243_v30 = vrot.slane %v4229_v26, %v5091_v5  ;;  %v4800_v12 = vcombine.high %v779_v56, %v783_v57  ;;  %v4802_v13 = vcombine.high %v780_v45, %v784_v10 }
 0x340   :  { %4036 = vmatprep.subr.bf16.mxu1 %v4754_v16  ;;  %v4799_v14 = vcombine.low %v779_v56, %v783_v57  ;;  %v4801_v16 = vcombine.low %v780_v45, %v784_v10  ;;  %v4167_v46 = vcombine.high %v4069_v23, %v4069_v23  ;;  %v4174_v24 = vrot.slane %v4069_v23, %v5091_v5 }
 0x341   :  { %v4244_v34 = vcombine.low %v4236_v28, %v4243_v30  ;;  %v4124_v26 = vmul.f32 %v5229_v0, %v5136_v17  ;;  %v4127_v17 = vmul.f32 %v5229_v0, %v5159_v22 }
 0x342   :  { %3873 = vmatpush1.bf16.msra.mxu0 %v4751_v27  ;;  %v4181_v25 = vrot.slane %v4167_v46, %v5091_v5  ;;  %v4182_v31 = vcombine.high %v4174_v24, %v4174_v24 }
 0x343   :  { %4037 = vmatpush1.bf16.msra.mxu1 %v4753_v29  ;;  %3874 = vmatprep.subr.bf16.mxu0 %v4760_v15  ;;  %4264 = vst [vmem:[#allocation12] sm:$0xff] %v4244_v34  ;;  %v4126_v29 = vmul.f32 %v5229_v0, %v5146_v6 }
 0x344   :  { %4038 = vmatprep.subr.bf16.mxu1 %v4762_v18 }
 0x346   :  { %3875 = vmatpush1.bf16.msra.mxu0 %v4759_v35  ;;  %v4183_v35 = vcombine.high %v4181_v25, %v4181_v25 }
 0x347   :  { %4039 = vmatpush1.bf16.msra.mxu1 %v4761_v36  ;;  %3876 = vmatprep.subr.bf16.mxu0 %v4768_v37 }
 0x348   :  { %4040 = vmatprep.subr.bf16.mxu1 %v4770_v38 }
 0x34a   :  { %3877 = vmatpush1.bf16.msra.mxu0 %v4767_v42 }
 0x34b   :  { %4041 = vmatpush1.bf16.msra.mxu1 %v4769_v43  ;;  %3878 = vmatprep.subr.bf16.mxu0 %v4776_v48 }
 0x34c   :  { %4042 = vmatprep.subr.bf16.mxu1 %v4778_v4 }
 0x34e   :  { %3879 = vmatpush1.bf16.msra.mxu0 %v4775_v59 }
 0x34f   :  { %4043 = vmatpush1.bf16.msra.mxu1 %v4777_v60  ;;  %3880 = vmatprep.subr.bf16.mxu0 %v4784_v61 }
 0x350   :  { %4044 = vmatprep.subr.bf16.mxu1 %v4786_v62 }
 0x352   :  { %3881 = vmatpush1.bf16.msra.mxu0 %v4783_v51 }
 0x353   :  { %4045 = vmatpush1.bf16.msra.mxu1 %v4785_v52  ;;  %3882 = vmatprep.subr.bf16.mxu0 %v4792_v53 }
 0x354   :  { %4046 = vmatprep.subr.bf16.mxu1 %v4794_v55 }
 0x356   :  { %3883 = vmatpush1.bf16.msra.mxu0 %v4791_v20 }
 0x357   :  { %4047 = vmatpush1.bf16.msra.mxu1 %v4793_v11  ;;  %3884 = vmatprep.subr.bf16.mxu0 %v4800_v12 }
 0x358   :  { %4048 = vmatprep.subr.bf16.mxu1 %v4802_v13 }
 0x35a   :  { %3885 = vmatpush1.bf16.msra.mxu0 %v4799_v14 }
 0x35b   :  { %4049 = vmatpush1.bf16.msra.mxu1 %v4801_v16 }
 0x35d   :  { %3887 = vmatmul.mubr.bf16.vlgmr.msra.gmra.mrb[4].mxu0 %v5211_v39 }
 0x35e   :  { %4051 = vmatmul.mubr.bf16.vlgmr.msra.gmra.mrb[4].mxu1 %v5211_v39  ;;  %v4125_v39 = vmul.f32 %v5229_v0, %v5150_v7 }
 0x430   :  { %v3888_v3 = vpop.f32.mrb[4].mxu0 }
 0x431   :  { %v4136_v27 = vmul.f32 %v5233_v9, %v3888_v3  ;;  %v4052_v28 = vpop.f32.mrb[4].mxu1  ;;  %v3890_v15 = vpop.f32.mrb[5].mxu0 }
 0x432   :  { %v4138_v30 = vmul.f32 %v5233_v9, %v4052_v28  ;;  %v4137_v18 = vmul.f32 %v5233_v9, %v3890_v15  ;;  %v4054_v19 = vpop.f32.mrb[5].mxu1  ;;  %v3892_v32 = vpop.f32.mrb[6].mxu0 }
 0x433   :  { %v4144_v33 = vadd.f32 %v4136_v27, %v4124_v26  ;;  %v4139_v34 = vmul.f32 %v5233_v9, %v4054_v19  ;;  %v4056_v36 = vpop.f32.mrb[6].mxu1  ;;  %v3893_v6 = vpop.f32.mrb[7].mxu0 }
 0x434   :  { %v4146_v37 = vadd.f32 %v4138_v30, %v4126_v29  ;;  %v4145_v38 = vadd.f32 %v4137_v18, %v4125_v39  ;;  %v4057_v21 = vpop.f32.mrb[7].mxu1 }
 0x435   :  { %v4196_v44 = vsub.f32 %v4144_v33, %v4174_v24  ;;  %v4147_v47 = vadd.f32 %v4139_v34, %v4127_v17 }
 0x436   :  { %v4198_v7 = vsub.f32 %v4146_v37, %v4181_v25  ;;  %v4197_v40 = vsub.f32 %v4145_v38, %v4182_v31 }
 0x437   :  { %v4208_v42 = vmul.f32 %v5247_v41, %v4196_v44  ;;  %v4199_v43 = vsub.f32 %v4147_v47, %v4183_v35 }
 0x438   :  { %v4210_v48 = vmul.f32 %v5247_v41, %v4198_v7  ;;  %v4209_v4 = vmul.f32 %v5247_v41, %v4197_v40 }
 0x439   :  { %v4216_v22 = vmul.f32 %v4208_v42, %v4196_v44  ;;  %v4211_v0 = vmul.f32 %v5247_v41, %v4199_v43 }
 0x43a   :  { %v4218_v9 = vmul.f32 %v4210_v48, %v4198_v7  ;;  %v4217_v50 = vmul.f32 %v4209_v4, %v4197_v40 }
 0x43b   :  { %v4219_v49 = vmul.f32 %v4211_v0, %v4199_v43 }
 0x43c   :  { %v4245_v54 = vcombine.low %v4216_v22, %v4217_v50 }
 0x43d   :  { %v4246_v58 = vcombine.low %v4218_v9, %v4219_v49 }
 0x43e   :  { %v4253_v59 = vrot.slane %v4245_v54, %v5091_v5 }
 0x43f   :  { %v4260_v60 = vrot.slane %v4246_v58, %v5091_v5 }
 0x441   :  { %v4261_v61 = vcombine.low %v4253_v59, %v4260_v60 }
 0x443   :  { %4265 = vst [vmem:[#allocation12 + $0x8] sm:$0xff] %v4261_v61 }
 0x444   :  { %4975 = shalt.err (!%p4972_p8)
}
 0x445   :  { %s4976_s13 = scalar_lea.hbm %s5293_s4, 256 }
 0x446   :  { %p4977_p9 = scmp.ne.s32.totalorder %s5293_s4, %s4976_s13  ;;  %p4980_p10 = scmp.lt.u32.totalorder %s4976_s13, %s5293_s4 }
 0x448   :  { %p4982_p11 = pnand %p4980_p10, %p4977_p9 }
 0x44a   :  { %4985 = shalt.err (!%p4982_p11)
}
 0x44b   :  { %4275 = dma.vmem_to_hbm [thread:$0]  %s4273_s10, 256, %s5293_s4, [#allocation6]  }
 0x44c   :  { %4992 = dma.done.wait [#allocation6], 256  }
 0x44d   :  { %4993 = vsyncadd [#allocation6], 4294967040 }
 0x44e   :  { %4279 = vsyncpa [#allocation5], 1 }
 0x44f   :  { %4280 = vsyncpa [#allocation8], 1 }
 0x450   :  { %4281 = vsyncpa [#allocation11], 1 }
 0x451   :  { %4282 = vsyncpa [#allocation6], 1 }

</bundles_post_ra>
